<compile_context>
chip_gen: v7x
topology: tpu7x:2x2x1
jax: 0.10.0
libtpu: 0.0.40
codegen_flags: <defaults>
</compile_context>

<pallas_src>
import functools

import jax
import jax.numpy as jnp
from jax.experimental import pallas as pl
from jax.experimental.pallas import tpu as pltpu

IN_FEATURES = 1024
ENC_ARCH = (64, 32)
LATENT_DIM = 16
PAD = 128          # lane-dense padded width for hidden/latent dims (keep at 128)
MAX_TILE_N = 1024  # rows per grid step; bf16-in/f32-out double-buffered ~13 MiB


def _round_up(x, m):
    return (x + m - 1) // m * m


def _autoencoder_kernel(x_ref,
                        w1_ref, b1_ref, w2_ref, b2_ref, w3_ref, b3_ref,   # encoder
                        w4_ref, b4_ref, w5_ref, b5_ref, w6_ref, b6_ref,   # decoder_mu
                        out_ref):
    """One batch tile: encoder + decoder_mu. bf16 MXU matmuls, f32 accumulation."""

    def dense(h_bf16, w_ref, b_ref, relu):
        acc = jnp.dot(h_bf16, w_ref[...], preferred_element_type=jnp.float32)
        acc = acc + b_ref[...]
        if relu:
            acc = jnp.maximum(acc, 0.0)
        return acc

    x = x_ref[...]                              # already bf16 (cast once in wrapper)

    # encoder: relu, relu, identity ('none') on the latent layer
    h = dense(x, w1_ref, b1_ref, True).astype(jnp.bfloat16)
    h = dense(h, w2_ref, b2_ref, True).astype(jnp.bfloat16)
    z = dense(h, w3_ref, b3_ref, False).astype(jnp.bfloat16)

    # decoder_mu: relu, relu, sigmoid on the last layer
    d = dense(z, w4_ref, b4_ref, True).astype(jnp.bfloat16)
    d = dense(d, w5_ref, b5_ref, True).astype(jnp.bfloat16)
    d = dense(d, w6_ref, b6_ref, False)

    # sigmoid(d) = 1 / (1 + exp(-d)); exp + approx reciprocal run on the EUP slot
    # (free under the HBM bound, helps most on v5e). Clamp guards the approx
    # reciprocal from producing values epsilon-above 1.0.
    e = jnp.exp(-d)
    sig = jnp.minimum(pl.reciprocal(1.0 + e, approx=True), 1.0)
    out_ref[...] = sig.astype(out_ref.dtype)


def init_params(key, in_features=IN_FEATURES, enc_arch=ENC_ARCH,
                latent_dim=LATENT_DIM):
    """Deterministic synthetic parameters (PyTorch-Linear-style uniform init)."""
    dims_enc = (in_features,) + tuple(enc_arch) + (latent_dim,)
    dims_dec = (latent_dim,) + tuple(reversed(enc_arch)) + (in_features,)
    params = []
    for d_in, d_out in list(zip(dims_enc[:-1], dims_enc[1:])) + \
                       list(zip(dims_dec[:-1], dims_dec[1:])):
        key, kw, kb = jax.random.split(key, 3)
        bound = 1.0 / jnp.sqrt(jnp.float32(d_in))
        w = jax.random.uniform(kw, (d_in, d_out), jnp.float32, -bound, bound)
        b = jax.random.uniform(kb, (1, d_out), jnp.float32, -bound, bound)
        params += [w, b]
    return params


def prepare_params(params, pad=PAD):
    """Zero-pad in/out feature dims to multiples of `pad` (lane-dense) and cast
    weights to bf16. Call ONCE at parameter-load time, not per forward.

    Padded weight rows/cols and bias entries are exactly 0, so the real output
    columns are unchanged. Weights are bf16 (MXU inputs), biases stay f32.
    """
    padded = []
    for li in range(len(params) // 2):
        w, b = params[2 * li], params[2 * li + 1]
        d_in, d_out = w.shape
        pin, pout = _round_up(d_in, pad), _round_up(d_out, pad)
        w_p = jnp.zeros((pin, pout), jnp.float32).at[:d_in, :d_out].set(w)
        b_p = jnp.zeros((1, pout), jnp.float32).at[:, :d_out].set(b)
        padded += [w_p.astype(jnp.bfloat16), b_p]
    return padded


def autoencoder_forward(x_nchw, padded_params, out_dtype=jnp.float32):
    """Returns a tuple (decoded_mu,) matching Autoencoder.forward.

    `padded_params` must come from prepare_params (done once at load time).
    `out_dtype=jnp.bfloat16` halves output HBM traffic (numerics tradeoff vs the
    f32 torch reference; sigmoid outputs tolerate bf16 well).
    """
    n = x_nchw.shape[0]
    # torch Flatten on NCHW + single bf16 cast (halves input HBM traffic; value
    # is identical to what the kernel computed before via its own astype).
    x_flat = x_nchw.reshape(n, -1).astype(jnp.bfloat16)
    in_dim = x_flat.shape[1]
    out_dim = padded_params[-1].shape[-1]
    # This config has in_features = 1024 (multiple of 128), so the padded output
    # width equals the real output width and no column slicing is needed.
    assert in_dim % 128 == 0 and padded_params[0].shape[0] == in_dim

    # Tile sizing:
    #  * multiple of 16 (bf16 sublane packing of the input block),
    #  * >=2 grid steps once n exceeds one tile so the "parallel" axis spans
    #    both v7x TensorCores (no-op on single-TC v5e/v6e),
    #  * capped at MAX_TILE_N rows so double-buffered bf16-in/f32-out tiles fit
    #    the tightest VMEM budget (v7x: 64 MiB per TC).
    tile = max(16, min(MAX_TILE_N, _round_up(pl.cdiv(n, 2), 16)))
    grid = (pl.cdiv(n, tile),)   # ragged last block clipped by Pallas: no pad/slice

    io_in_spec = pl.BlockSpec((tile, in_dim), lambda i: (i, 0))
    io_out_spec = pl.BlockSpec((tile, out_dim), lambda i: (i, 0))

    def resident_spec(shape):
        # Same block every grid step -> weights/biases stay VMEM-resident.
        return pl.BlockSpec(shape, lambda i: (0, 0))

    in_specs = [io_in_spec] + [resident_spec(p.shape) for p in padded_params]

    flops = 2 * n * sum(int(w.shape[0]) * int(w.shape[1])
                        for w in padded_params[0::2])
    bytes_accessed = (n * (in_dim * 2 + out_dim * jnp.dtype(out_dtype).itemsize)
                      + sum(int(p.size) * p.dtype.itemsize for p in padded_params))
    cost = pl.CostEstimate(flops=flops,
                           transcendentals=2 * n * out_dim,   # exp + reciprocal
                           bytes_accessed=bytes_accessed)

    decoded_mu = pl.pallas_call(
        _autoencoder_kernel,
        out_shape=jax.ShapeDtypeStruct((n, out_dim), out_dtype),
        grid=grid,
        in_specs=in_specs,
        out_specs=io_out_spec,
        compiler_params=pltpu.CompilerParams(
            dimension_semantics=("parallel",),           # v7x: shard over 2 TCs
            vmem_limit_bytes=48 * 1024 * 1024),          # plenty on v5e/v6e, safe on v7x
        cost_estimate=cost,
    )(x_flat, *padded_params)

    # decoder_sig / decoder_cluster disabled -> tuple of length 1
    # TODO(synk): decoder_sig / decoder_cluster / CholLayer branches of
    # Autoencoder.forward are disabled in this configuration and not implemented.
    return (decoded_mu,)


if __name__ == "__main__":
    key = jax.random.PRNGKey(0)
    k_x, k_p = jax.random.split(key)

    # small shapes consistent with the module: batch=2, C=4, H=W=16 -> 1024 feats
    x = jax.random.normal(k_x, (2, 4, 16, 16), jnp.float32)
    params = init_params(k_p, in_features=4 * 16 * 16, enc_arch=(64, 32),
                         latent_dim=16)
    padded_params = prepare_params(params)          # once, at parameter-load time

    fwd = jax.jit(functools.partial(autoencoder_forward,
                                    padded_params=padded_params))
    (decoded_mu,) = fwd(x)
    jax.block_until_ready(decoded_mu)

    assert decoded_mu.shape == (2, 4 * 16 * 16)
    assert bool(jnp.all(jnp.isfinite(decoded_mu)))
    assert bool(jnp.all((decoded_mu >= 0.0) & (decoded_mu <= 1.0)))  # sigmoid output
    print("KERNEL_OK")
</pallas_src>

<mosaic_0001>
module attributes {stable_mosaic.version = 11 : i64} {
  func.func @_autoencoder_kernel(%arg0: i32, %arg1: memref<16x1024xbf16, #tpu.memory_space<vmem>>, %arg2: memref<1024x128xbf16, #tpu.memory_space<vmem>>, %arg3: memref<1x128xf32, #tpu.memory_space<vmem>>, %arg4: memref<128x128xbf16, #tpu.memory_space<vmem>>, %arg5: memref<1x128xf32, #tpu.memory_space<vmem>>, %arg6: memref<128x128xbf16, #tpu.memory_space<vmem>>, %arg7: memref<1x128xf32, #tpu.memory_space<vmem>>, %arg8: memref<128x128xbf16, #tpu.memory_space<vmem>>, %arg9: memref<1x128xf32, #tpu.memory_space<vmem>>, %arg10: memref<128x128xbf16, #tpu.memory_space<vmem>>, %arg11: memref<1x128xf32, #tpu.memory_space<vmem>>, %arg12: memref<128x1024xbf16, #tpu.memory_space<vmem>>, %arg13: memref<1x1024xf32, #tpu.memory_space<vmem>>, %arg14: memref<16x1024xf32, #tpu.memory_space<vmem>>) attributes {dimension_semantics = [#tpu.dimension_semantics<parallel>], iteration_bounds = array<i64: 1>, scalar_prefetch = 0 : i64, scratch_operands = 0 : i64, tpu.core_type = #tpu.core_type<tc>, window_params = [{transform_indices = @transform_0, window_bounds = array<i64: 16, 1024>}, {pipeline_mode = #tpu.pipeline_mode<synchronous>, transform_indices = @transform_1, window_bounds = array<i64: 1024, 128>}, {pipeline_mode = #tpu.pipeline_mode<synchronous>, transform_indices = @transform_2, window_bounds = array<i64: 1, 128>}, {pipeline_mode = #tpu.pipeline_mode<synchronous>, transform_indices = @transform_3, window_bounds = array<i64: 128, 128>}, {pipeline_mode = #tpu.pipeline_mode<synchronous>, transform_indices = @transform_4, window_bounds = array<i64: 1, 128>}, {pipeline_mode = #tpu.pipeline_mode<synchronous>, transform_indices = @transform_5, window_bounds = array<i64: 128, 128>}, {pipeline_mode = #tpu.pipeline_mode<synchronous>, transform_indices = @transform_6, window_bounds = array<i64: 1, 128>}, {pipeline_mode = #tpu.pipeline_mode<synchronous>, transform_indices = @transform_7, window_bounds = array<i64: 128, 128>}, {pipeline_mode = #tpu.pipeline_mode<synchronous>, transform_indices = @transform_8, window_bounds = array<i64: 1, 128>}, {pipeline_mode = #tpu.pipeline_mode<synchronous>, transform_indices = @transform_9, window_bounds = array<i64: 128, 128>}, {pipeline_mode = #tpu.pipeline_mode<synchronous>, transform_indices = @transform_10, window_bounds = array<i64: 1, 128>}, {pipeline_mode = #tpu.pipeline_mode<synchronous>, transform_indices = @transform_11, window_bounds = array<i64: 128, 1024>}, {pipeline_mode = #tpu.pipeline_mode<synchronous>, transform_indices = @transform_12, window_bounds = array<i64: 1, 1024>}, {transform_indices = @transform_13, window_bounds = array<i64: 16, 1024>}]} {
    %c0 = arith.constant 0 : index
    %c0_0 = arith.constant 0 : index
    %0 = vector.load %arg1[%c0, %c0_0] : memref<16x1024xbf16, #tpu.memory_space<vmem>>, vector<16x1024xbf16>
    %c0_1 = arith.constant 0 : index
    %c0_2 = arith.constant 0 : index
    %1 = vector.load %arg2[%c0_1, %c0_2] : memref<1024x128xbf16, #tpu.memory_space<vmem>>, vector<1024x128xbf16>
    %cst = arith.constant dense<0.000000e+00> : vector<16x128xf32>
    %2 = tpu.matmul %0, %1, %cst {dimension_numbers = #tpu.dot_dimension_numbers<[1], [0], [0], [1], [0, 0, 1, 1], [], []>} : vector<16x1024xbf16>, vector<1024x128xbf16>, vector<16x128xf32> -> vector<16x128xf32>
    %c0_3 = arith.constant 0 : index
    %c0_4 = arith.constant 0 : index
    %3 = vector.load %arg3[%c0_3, %c0_4] : memref<1x128xf32, #tpu.memory_space<vmem>>, vector<1x128xf32>
    %4 = vector.broadcast %3 : vector<1x128xf32> to vector<16x128xf32>
    %5 = arith.addf %2, %4 : vector<16x128xf32>
    %cst_5 = arith.constant 0.000000e+00 : f32
    %6 = vector.broadcast %cst_5 : f32 to vector<16x128xf32>
    %7 = arith.maximumf %5, %6 : vector<16x128xf32>
    %8 = arith.truncf %7 : vector<16x128xf32> to vector<16x128xbf16>
    %c0_6 = arith.constant 0 : index
    %c0_7 = arith.constant 0 : index
    %9 = vector.load %arg4[%c0_6, %c0_7] : memref<128x128xbf16, #tpu.memory_space<vmem>>, vector<128x128xbf16>
    %cst_8 = arith.constant dense<0.000000e+00> : vector<16x128xf32>
    %10 = tpu.matmul %8, %9, %cst_8 {dimension_numbers = #tpu.dot_dimension_numbers<[1], [0], [0], [1], [0, 0, 1, 1], [], []>} : vector<16x128xbf16>, vector<128x128xbf16>, vector<16x128xf32> -> vector<16x128xf32>
    %c0_9 = arith.constant 0 : index
    %c0_10 = arith.constant 0 : index
    %11 = vector.load %arg5[%c0_9, %c0_10] : memref<1x128xf32, #tpu.memory_space<vmem>>, vector<1x128xf32>
    %12 = vector.broadcast %11 : vector<1x128xf32> to vector<16x128xf32>
    %13 = arith.addf %10, %12 : vector<16x128xf32>
    %cst_11 = arith.constant 0.000000e+00 : f32
    %14 = vector.broadcast %cst_11 : f32 to vector<16x128xf32>
    %15 = arith.maximumf %13, %14 : vector<16x128xf32>
    %16 = arith.truncf %15 : vector<16x128xf32> to vector<16x128xbf16>
    %c0_12 = arith.constant 0 : index
    %c0_13 = arith.constant 0 : index
    %17 = vector.load %arg6[%c0_12, %c0_13] : memref<128x128xbf16, #tpu.memory_space<vmem>>, vector<128x128xbf16>
    %cst_14 = arith.constant dense<0.000000e+00> : vector<16x128xf32>
    %18 = tpu.matmul %16, %17, %cst_14 {dimension_numbers = #tpu.dot_dimension_numbers<[1], [0], [0], [1], [0, 0, 1, 1], [], []>} : vector<16x128xbf16>, vector<128x128xbf16>, vector<16x128xf32> -> vector<16x128xf32>
    %c0_15 = arith.constant 0 : index
    %c0_16 = arith.constant 0 : index
    %19 = vector.load %arg7[%c0_15, %c0_16] : memref<1x128xf32, #tpu.memory_space<vmem>>, vector<1x128xf32>
    %20 = vector.broadcast %19 : vector<1x128xf32> to vector<16x128xf32>
    %21 = arith.addf %18, %20 : vector<16x128xf32>
    %22 = arith.truncf %21 : vector<16x128xf32> to vector<16x128xbf16>
    %c0_17 = arith.constant 0 : index
    %c0_18 = arith.constant 0 : index
    %23 = vector.load %arg8[%c0_17, %c0_18] : memref<128x128xbf16, #tpu.memory_space<vmem>>, vector<128x128xbf16>
    %cst_19 = arith.constant dense<0.000000e+00> : vector<16x128xf32>
    %24 = tpu.matmul %22, %23, %cst_19 {dimension_numbers = #tpu.dot_dimension_numbers<[1], [0], [0], [1], [0, 0, 1, 1], [], []>} : vector<16x128xbf16>, vector<128x128xbf16>, vector<16x128xf32> -> vector<16x128xf32>
    %c0_20 = arith.constant 0 : index
    %c0_21 = arith.constant 0 : index
    %25 = vector.load %arg9[%c0_20, %c0_21] : memref<1x128xf32, #tpu.memory_space<vmem>>, vector<1x128xf32>
    %26 = vector.broadcast %25 : vector<1x128xf32> to vector<16x128xf32>
    %27 = arith.addf %24, %26 : vector<16x128xf32>
    %cst_22 = arith.constant 0.000000e+00 : f32
    %28 = vector.broadcast %cst_22 : f32 to vector<16x128xf32>
    %29 = arith.maximumf %27, %28 : vector<16x128xf32>
    %30 = arith.truncf %29 : vector<16x128xf32> to vector<16x128xbf16>
    %c0_23 = arith.constant 0 : index
    %c0_24 = arith.constant 0 : index
    %31 = vector.load %arg10[%c0_23, %c0_24] : memref<128x128xbf16, #tpu.memory_space<vmem>>, vector<128x128xbf16>
    %cst_25 = arith.constant dense<0.000000e+00> : vector<16x128xf32>
    %32 = tpu.matmul %30, %31, %cst_25 {dimension_numbers = #tpu.dot_dimension_numbers<[1], [0], [0], [1], [0, 0, 1, 1], [], []>} : vector<16x128xbf16>, vector<128x128xbf16>, vector<16x128xf32> -> vector<16x128xf32>
    %c0_26 = arith.constant 0 : index
    %c0_27 = arith.constant 0 : index
    %33 = vector.load %arg11[%c0_26, %c0_27] : memref<1x128xf32, #tpu.memory_space<vmem>>, vector<1x128xf32>
    %34 = vector.broadcast %33 : vector<1x128xf32> to vector<16x128xf32>
    %35 = arith.addf %32, %34 : vector<16x128xf32>
    %cst_28 = arith.constant 0.000000e+00 : f32
    %36 = vector.broadcast %cst_28 : f32 to vector<16x128xf32>
    %37 = arith.maximumf %35, %36 : vector<16x128xf32>
    %38 = arith.truncf %37 : vector<16x128xf32> to vector<16x128xbf16>
    %c0_29 = arith.constant 0 : index
    %c0_30 = arith.constant 0 : index
    %39 = vector.load %arg12[%c0_29, %c0_30] : memref<128x1024xbf16, #tpu.memory_space<vmem>>, vector<128x1024xbf16>
    %cst_31 = arith.constant dense<0.000000e+00> : vector<16x1024xf32>
    %40 = tpu.matmul %38, %39, %cst_31 {dimension_numbers = #tpu.dot_dimension_numbers<[1], [0], [0], [1], [0, 0, 1, 1], [], []>} : vector<16x128xbf16>, vector<128x1024xbf16>, vector<16x1024xf32> -> vector<16x1024xf32>
    %c0_32 = arith.constant 0 : index
    %c0_33 = arith.constant 0 : index
    %41 = vector.load %arg13[%c0_32, %c0_33] : memref<1x1024xf32, #tpu.memory_space<vmem>>, vector<1x1024xf32>
    %42 = vector.broadcast %41 : vector<1x1024xf32> to vector<16x1024xf32>
    %43 = arith.addf %40, %42 : vector<16x1024xf32>
    %cst_34 = arith.constant 0.000000e+00 : f32
    %44 = vector.broadcast %cst_34 : f32 to vector<16x1024xf32>
    %45 = arith.subf %44, %43 : vector<16x1024xf32>
    %46 = math.exp %45 : vector<16x1024xf32>
    %cst_35 = arith.constant 1.000000e+00 : f32
    %47 = vector.broadcast %cst_35 : f32 to vector<16x1024xf32>
    %48 = arith.addf %47, %46 : vector<16x1024xf32>
    %49 = tpu.reciprocal %48 {approx = true} : vector<16x1024xf32> -> vector<16x1024xf32>
    %cst_36 = arith.constant 1.000000e+00 : f32
    %50 = vector.broadcast %cst_36 : f32 to vector<16x1024xf32>
    %51 = arith.minimumf %49, %50 : vector<16x1024xf32>
    %c0_37 = arith.constant 0 : index
    %c0_38 = arith.constant 0 : index
    %52 = vector.load %arg14[%c0_37, %c0_38] : memref<16x1024xf32, #tpu.memory_space<vmem>>, vector<16x1024xf32>
    tpu.vector_store %arg14[%c0_37, %c0_38], %51 {strides = array<i32>} : memref<16x1024xf32, #tpu.memory_space<vmem>>, vector<16x1024xf32>,
    return
  }
  func.func @transform_0(%arg0: i32) -> (i32, i32) {
    %c0_i32 = arith.constant 0 : i32
    %c0_i32_0 = arith.constant 0 : i32
    return %arg0, %c0_i32 : i32, i32
  }
  func.func @transform_1(%arg0: i32) -> (i32, i32) {
    %c0_i32 = arith.constant 0 : i32
    %c0_i32_0 = arith.constant 0 : i32
    %c0_i32_1 = arith.constant 0 : i32
    return %c0_i32, %c0_i32_0 : i32, i32
  }
  func.func @transform_2(%arg0: i32) -> (i32, i32) {
    %c0_i32 = arith.constant 0 : i32
    %c0_i32_0 = arith.constant 0 : i32
    %c0_i32_1 = arith.constant 0 : i32
    return %c0_i32, %c0_i32_0 : i32, i32
  }
  func.func @transform_3(%arg0: i32) -> (i32, i32) {
    %c0_i32 = arith.constant 0 : i32
    %c0_i32_0 = arith.constant 0 : i32
    %c0_i32_1 = arith.constant 0 : i32
    return %c0_i32, %c0_i32_0 : i32, i32
  }
  func.func @transform_4(%arg0: i32) -> (i32, i32) {
    %c0_i32 = arith.constant 0 : i32
    %c0_i32_0 = arith.constant 0 : i32
    %c0_i32_1 = arith.constant 0 : i32
    return %c0_i32, %c0_i32_0 : i32, i32
  }
  func.func @transform_5(%arg0: i32) -> (i32, i32) {
    %c0_i32 = arith.constant 0 : i32
    %c0_i32_0 = arith.constant 0 : i32
    %c0_i32_1 = arith.constant 0 : i32
    return %c0_i32, %c0_i32_0 : i32, i32
  }
  func.func @transform_6(%arg0: i32) -> (i32, i32) {
    %c0_i32 = arith.constant 0 : i32
    %c0_i32_0 = arith.constant 0 : i32
    %c0_i32_1 = arith.constant 0 : i32
    return %c0_i32, %c0_i32_0 : i32, i32
  }
  func.func @transform_7(%arg0: i32) -> (i32, i32) {
    %c0_i32 = arith.constant 0 : i32
    %c0_i32_0 = arith.constant 0 : i32
    %c0_i32_1 = arith.constant 0 : i32
    return %c0_i32, %c0_i32_0 : i32, i32
  }
  func.func @transform_8(%arg0: i32) -> (i32, i32) {
    %c0_i32 = arith.constant 0 : i32
    %c0_i32_0 = arith.constant 0 : i32
    %c0_i32_1 = arith.constant 0 : i32
    return %c0_i32, %c0_i32_0 : i32, i32
  }
  func.func @transform_9(%arg0: i32) -> (i32, i32) {
    %c0_i32 = arith.constant 0 : i32
    %c0_i32_0 = arith.constant 0 : i32
    %c0_i32_1 = arith.constant 0 : i32
    return %c0_i32, %c0_i32_0 : i32, i32
  }
  func.func @transform_10(%arg0: i32) -> (i32, i32) {
    %c0_i32 = arith.constant 0 : i32
    %c0_i32_0 = arith.constant 0 : i32
    %c0_i32_1 = arith.constant 0 : i32
    return %c0_i32, %c0_i32_0 : i32, i32
  }
  func.func @transform_11(%arg0: i32) -> (i32, i32) {
    %c0_i32 = arith.constant 0 : i32
    %c0_i32_0 = arith.constant 0 : i32
    %c0_i32_1 = arith.constant 0 : i32
    return %c0_i32, %c0_i32_0 : i32, i32
  }
  func.func @transform_12(%arg0: i32) -> (i32, i32) {
    %c0_i32 = arith.constant 0 : i32
    %c0_i32_0 = arith.constant 0 : i32
    %c0_i32_1 = arith.constant 0 : i32
    return %c0_i32, %c0_i32_0 : i32, i32
  }
  func.func @transform_13(%arg0: i32) -> (i32, i32) {
    %c0_i32 = arith.constant 0 : i32
    %c0_i32_0 = arith.constant 0 : i32
    return %arg0, %c0_i32 : i32, i32
  }
}

</mosaic_0001>

<bundles_post_ra>
// kernel: autoencoder_forward.1
= control target key start
LH: loop header
LB: loop body
LE: loop exit
PB: predicated region body
PF: predicated region fallthrough
CT: control target
= control target key end

     0   :  { %18 = vsyncpa [#allocation3], 0  ;;  %v208_v29 = vlaneseq  ;;  %v2825_v33 = vmov 1966171168   ;;  %vm2827_vm0 = vmmov 0   ;;  %s3573_s0 = inlined_call_operand.vmem [shape: bf16[2,1024], index: 0, kind: input, shape index: {}]   ;;  %s3574_s1 = inlined_call_operand.vmem [shape: bf16[1024,128], index: 1, kind: input, shape index: {}]   ;;  %s3575_s2 = inlined_call_operand.vmem [shape: f32[1,128], index: 2, kind: input, shape index: {}]   ;;  %s3576_s3 = inlined_call_operand.vmem [shape: bf16[128,128], index: 3, kind: input, shape index: {}]   ;;  %s3577_s4 = inlined_call_operand.vmem [shape: f32[1,128], index: 4, kind: input, shape index: {}]   ;;  %s3578_s5 = inlined_call_operand.vmem [shape: bf16[128,128], index: 5, kind: input, shape index: {}]   ;;  %s3579_s6 = inlined_call_operand.vmem [shape: f32[1,128], index: 6, kind: input, shape index: {}]   ;;  %s3580_s7 = inlined_call_operand.vmem [shape: bf16[128,128], index: 7, kind: input, shape index: {}]   ;;  %s3581_s8 = inlined_call_operand.vmem [shape: f32[1,128], index: 8, kind: input, shape index: {}]   ;;  %s3582_s9 = inlined_call_operand.vmem [shape: bf16[128,128], index: 9, kind: input, shape index: {}]   ;;  %s3583_s10 = inlined_call_operand.vmem [shape: f32[1,128], index: 10, kind: input, shape index: {}]   ;;  %s3584_s11 = inlined_call_operand.vmem [shape: bf16[128,1024], index: 11, kind: input, shape index: {}]   ;;  %s3585_s12 = inlined_call_operand.vmem [shape: f32[1,1024], index: 12, kind: input, shape index: {}]   ;;  %s3586_s13 = inlined_call_operand.hbm [shape: f32[2,1024], index: 13, kind: output, shape index: {}]  }
   0x1   :  { %v2629_v0 = vld [vmem:[%s3574_s1 + $0x40] sm:$0xff]   ;;  %v2633_v4 = vld [vmem:[%s3574_s1 + $0x48] sm:$0xff]   ;;  %v2637_v8 = vld [vmem:[%s3574_s1 + $0x50] sm:$0xff]   ;;  %v206_v34 = vunpack.c.l.s4 %v2825_v33 }
   0x2   :  { %v2630_v1 = vld [vmem:[%s3574_s1 + $0xc0] sm:$0xff]   ;;  %2417 = vmatprep.subr.bf16.mxu0 %v2629_v0  ;;  %v2634_v5 = vld [vmem:[%s3574_s1 + $0xc8] sm:$0xff]   ;;  %v2638_v9 = vld [vmem:[%s3574_s1 + $0xd0] sm:$0xff]   ;;  %v2999_v35 = vshrl.u32 %v208_v29, 7 }
   0x3   :  { %v2631_v2 = vld [vmem:[%s3574_s1] sm:$0xff]   ;;  %2439 = vmatprep.subr.bf16.mxu1 %v2630_v1  ;;  %v2635_v6 = vld [vmem:[%s3574_s1 + $0x8] sm:$0xff]   ;;  %v2639_v10 = vld [vmem:[%s3574_s1 + $0x10] sm:$0xff]   ;;  %v207_v39 = vunpack.c.0.s8 %v206_v34 }
   0x4   :  { %v2632_v3 = vld [vmem:[%s3574_s1 + $0x80] sm:$0xff]   ;;  %2418 = vmatpush3.bf16.msra.mxu0 %v2631_v2  ;;  %v2636_v7 = vld [vmem:[%s3574_s1 + $0x88] sm:$0xff]   ;;  %v2640_v11 = vld [vmem:[%s3574_s1 + $0x90] sm:$0xff]  }
   0x5   :  { %2440 = vmatpush3.bf16.msra.mxu1 %v2632_v3  ;;  %2419 = vmatprep.subr.bf16.mxu0 %v2633_v4  ;;  %v2641_v12 = vld [vmem:[%s3574_s1 + $0x58] sm:$0xff]   ;;  %v2645_v16 = vld [vmem:[%s3574_s1 + $0x60] sm:$0xff]   ;;  %v2649_v20 = vld [vmem:[%s3574_s1 + $0x68] sm:$0xff]   ;;  %v3026_v45 = vsub.s32 %v207_v39, %v2999_v35 }
   0x6   :  { %2441 = vmatprep.subr.bf16.mxu1 %v2634_v5  ;;  %v2642_v13 = vld [vmem:[%s3574_s1 + $0xd8] sm:$0xff]   ;;  %v2646_v17 = vld [vmem:[%s3574_s1 + $0xe0] sm:$0xff]   ;;  %v2650_v21 = vld [vmem:[%s3574_s1 + $0xe8] sm:$0xff]  }
   0x7   :  { %v2643_v14 = vld [vmem:[%s3574_s1 + $0x18] sm:$0xff]   ;;  %v2647_v18 = vld [vmem:[%s3574_s1 + $0x20] sm:$0xff]   ;;  %v2651_v22 = vld [vmem:[%s3574_s1 + $0x28] sm:$0xff]  }
   0x8   :  { %2420 = vmatpush3.bf16.msra.mxu0 %v2635_v6  ;;  %v2644_v15 = vld [vmem:[%s3574_s1 + $0x98] sm:$0xff]   ;;  %v2648_v19 = vld [vmem:[%s3574_s1 + $0xa0] sm:$0xff]   ;;  %v2652_v23 = vld [vmem:[%s3574_s1 + $0xa8] sm:$0xff]  }
   0x9   :  { %2442 = vmatpush3.bf16.msra.mxu1 %v2636_v7  ;;  %2421 = vmatprep.subr.bf16.mxu0 %v2637_v8  ;;  %v2653_v24 = vld [vmem:[%s3574_s1 + $0x70] sm:$0xff]   ;;  %v2657_v28 = vld [vmem:[%s3574_s1 + $0x78] sm:$0xff]   ;;  %v2661_v36 = vld [vmem:[%s3573_s0] ss:$8 sps:$4 sm:$0xff]  }
   0xa   :  { %2443 = vmatprep.subr.bf16.mxu1 %v2638_v9  ;;  %v2654_v25 = vld [vmem:[%s3574_s1 + $0xf0] sm:$0xff]   ;;  %v2658_v30 = vld [vmem:[%s3574_s1 + $0xf8] sm:$0xff]   ;;  %v2663_v37 = vld [vmem:[%s3573_s0 + $0x4] ss:$8 sps:$4 sm:$0xff]   ;;  %v211_v47 = vrot.slane %v2661_v36, %v3026_v45 }
   0xb   :  { %v2655_v26 = vld [vmem:[%s3574_s1 + $0x30] sm:$0xff]   ;;  %v2659_v31 = vld [vmem:[%s3574_s1 + $0x38] sm:$0xff]   ;;  %v2667_v41 = vld [vmem:[%s3573_s0 + $0x20] ss:$8 sps:$4 sm:$0xff]   ;;  %v3039_v52 = vrot.slane %v2663_v37, %v3026_v45 }
   0xc   :  { %2422 = vmatpush3.bf16.msra.mxu0 %v2639_v10  ;;  %v2656_v27 = vld [vmem:[%s3574_s1 + $0xb0] sm:$0xff]   ;;  %v2660_v32 = vld [vmem:[%s3574_s1 + $0xb8] sm:$0xff]   ;;  %v2669_v42 = vld [vmem:[%s3573_s0 + $0x24] ss:$8 sps:$4 sm:$0xff]   ;;  %v239_v49 = vrot.slane %v2667_v41, %v3026_v45 }
   0xd   :  { %2444 = vmatpush3.bf16.msra.mxu1 %v2640_v11  ;;  %2423 = vmatprep.subr.bf16.mxu0 %v2641_v12  ;;  %v2664_v38 = vld [vmem:[%s3573_s0 + $0x10] ss:$8 sps:$4 sm:$0xff]   ;;  %v2666_v40 = vld [vmem:[%s3573_s0 + $0x14] ss:$8 sps:$4 sm:$0xff]   ;;  %v2673_v46 = vld [vmem:[%s3574_s1 + $0x140] sm:$0xff]   ;;  %v3045_v54 = vrot.slane %v2669_v42, %v3026_v45 }
   0xe   :  { %2445 = vmatprep.subr.bf16.mxu1 %v2642_v13  ;;  %v2670_v43 = vld [vmem:[%s3573_s0 + $0x30] ss:$8 sps:$4 sm:$0xff]   ;;  %v2672_v44 = vld [vmem:[%s3573_s0 + $0x34] ss:$8 sps:$4 sm:$0xff]   ;;  %v225_v48 = vrot.slane %v2664_v38, %v3026_v45  ;;  %v2674_v51 = vld [vmem:[%s3574_s1 + $0x1c0] sm:$0xff]   ;;  %v3042_v53 = vrot.slane %v2666_v40, %v3026_v45 }
   0xf   :  { %v253_v50 = vrot.slane %v2670_v43, %v3026_v45  ;;  %v3048_v55 = vrot.slane %v2672_v44, %v3026_v45  ;;  %v2675_v2 = vld [vmem:[%s3574_s1 + $0x100] sm:$0xff]   ;;  %v2677_v10 = vld [vmem:[%s3574_s1 + $0x148] sm:$0xff]   ;;  %v2698_v33 = vld [vmem:[%s3574_s1 + $0x1f0] sm:$0xff]  }
  0x10   :  { %2424 = vmatpush3.bf16.msra.mxu0 %v2643_v14  ;;  %v262_v56 = vcombine.high %v211_v47, %v225_v48  ;;  %v261_v58 = vcombine.low %v211_v47, %v225_v48  ;;  %v264_v60 = vcombine.high %v3039_v52, %v3042_v53  ;;  %v2676_v3 = vld [vmem:[%s3574_s1 + $0x180] sm:$0xff]   ;;  %v2678_v11 = vld [vmem:[%s3574_s1 + $0x1c8] sm:$0xff]   ;;  %v2699_v34 = vld [vmem:[%s3574_s1 + $0x130] sm:$0xff]   ;;  %v263_v38 = vcombine.low %v3039_v52, %v3042_v53 }
  0x11   :  { %2446 = vmatpush3.bf16.msra.mxu1 %v2644_v15  ;;  %2425 = vmatprep.subr.bf16.mxu0 %v2645_v16  ;;  %v266_v57 = vcombine.high %v239_v49, %v253_v50  ;;  %v265_v59 = vcombine.low %v239_v49, %v253_v50  ;;  %v268_v61 = vcombine.high %v3045_v54, %v3048_v55  ;;  %v2679_v12 = vld [vmem:[%s3574_s1 + $0x108] sm:$0xff]   ;;  %v2681_v16 = vld [vmem:[%s3574_s1 + $0x150] sm:$0xff]   ;;  %v2701_v37 = vld [vmem:[%s3574_s1 + $0x178] sm:$0xff]   ;;  %v2826_v49 = vmov 0.0  }
  0x12   :  { %2447 = vmatprep.subr.bf16.mxu1 %v2646_v17  ;;  %v289_v62 = vrot.slane %v262_v56, %v3026_v45  ;;  %v275_v0 = vrot.slane %v261_v58, %v3026_v45  ;;  %v296_v4 = vrot.slane %v264_v60, %v3026_v45  ;;  %v2680_v15 = vld [vmem:[%s3574_s1 + $0x188] sm:$0xff]   ;;  %v2682_v17 = vld [vmem:[%s3574_s1 + $0x1d0] sm:$0xff]   ;;  %v267_v39 = vcombine.low %v3045_v54, %v3048_v55  ;;  %v2702_v40 = vld [vmem:[%s3574_s1 + $0x1f8] sm:$0xff]  }
  0x13   :  { %v317_v63 = vrot.slane %v266_v57, %v3026_v45  ;;  %v303_v1 = vrot.slane %v265_v59, %v3026_v45  ;;  %v324_v5 = vrot.slane %v268_v61, %v3026_v45  ;;  %v2694_v29 = vld [vmem:[%s3574_s1 + $0x1e8] sm:$0xff]   ;;  %v2700_v36 = vld [vmem:[%s3574_s1 + $0x1b0] sm:$0xff]   ;;  %v2703_v41 = vld [vmem:[%s3574_s1 + $0x138] sm:$0xff]   ;;  %v282_v43 = vrot.slane %v263_v38, %v3026_v45 }
  0x14   :  { %2426 = vmatpush3.bf16.msra.mxu0 %v2647_v18  ;;  %v2683_v18 = vld [vmem:[%s3574_s1 + $0x110] sm:$0xff]   ;;  %v2704_v42 = vld [vmem:[%s3574_s1 + $0x1b8] sm:$0xff]   ;;  %v310_v44 = vrot.slane %v267_v39, %v3026_v45  ;;  %v2705_v48 = vld [vmem:[%s3576_s3] sm:$0xff]  }
  0x15   :  { %2448 = vmatpush3.bf16.msra.mxu1 %v2648_v19  ;;  %2427 = vmatprep.subr.bf16.mxu0 %v2649_v20  ;;  %v329_v6 = vcombine.low %v289_v62, %v317_v63  ;;  %v330_v7 = vcombine.high %v289_v62, %v317_v63  ;;  %v325_v8 = vcombine.low %v275_v0, %v303_v1  ;;  %v2684_v19 = vld [vmem:[%s3574_s1 + $0x190] sm:$0xff]   ;;  %v2685_v20 = vld [vmem:[%s3574_s1 + $0x158] sm:$0xff]   ;;  %v2706_v45 = vld [vmem:[%s3576_s3 + $0x8] sm:$0xff]  }
  0x16   :  { %2449 = vmatprep.subr.bf16.mxu1 %v2650_v21  ;;  %v326_v9 = vcombine.high %v275_v0, %v303_v1  ;;  %v331_v13 = vcombine.low %v296_v4, %v324_v5  ;;  %v332_v14 = vcombine.high %v296_v4, %v324_v5  ;;  %v2686_v21 = vld [vmem:[%s3574_s1 + $0x1d8] sm:$0xff]   ;;  %v328_v47 = vcombine.high %v282_v43, %v310_v44  ;;  %v2707_v50 = vld [vmem:[%s3576_s3 + $0x10] sm:$0xff]   ;;  %v2709_v52 = vld [vmem:[%s3576_s3 + $0x20] sm:$0xff]  }
  0x17   :  { %757 = vmatprep.mubr.bf16.mxu0 %v329_v6  ;;  %798 = vmatprep.mubr.bf16.mxu1 %v330_v7  ;;  %v2710_v53 = vld [vmem:[%s3576_s3 + $0x28] sm:$0xff]   ;;  %v2711_v54 = vld [vmem:[%s3576_s3 + $0x30] sm:$0xff]   ;;  %v2712_v55 = vld [vmem:[%s3576_s3 + $0x38] sm:$0xff]  }
  0x18   :  { %2428 = vmatpush3.bf16.msra.mxu0 %v2651_v22  ;;  %v2687_v22 = vld [vmem:[%s3574_s1 + $0x118] sm:$0xff]   ;;  %v2713_v56 = vld [vmem:[%s3578_s5] sm:$0xff]   ;;  %v2714_v57 = vld [vmem:[%s3578_s5 + $0x8] sm:$0xff]  }
  0x19   :  { %2450 = vmatpush3.bf16.msra.mxu1 %v2652_v23  ;;  %2429 = vmatprep.subr.bf16.mxu0 %v2653_v24  ;;  %v2688_v23 = vld [vmem:[%s3574_s1 + $0x198] sm:$0xff]   ;;  %v2689_v24 = vld [vmem:[%s3574_s1 + $0x160] sm:$0xff]   ;;  %v2715_v58 = vld [vmem:[%s3578_s5 + $0x10] sm:$0xff]  }
  0x1a   :  { %2451 = vmatprep.subr.bf16.mxu1 %v2654_v25  ;;  %v2690_v25 = vld [vmem:[%s3574_s1 + $0x1e0] sm:$0xff]   ;;  %v2716_v59 = vld [vmem:[%s3578_s5 + $0x18] sm:$0xff]   ;;  %v2718_v61 = vld [vmem:[%s3578_s5 + $0x28] sm:$0xff]  }
  0x1b   :  { %v2717_v60 = vld [vmem:[%s3578_s5 + $0x20] sm:$0xff]   ;;  %v2722_v38 = vld [vmem:[%s3580_s7 + $0x8] sm:$0xff]   ;;  %v2723_v39 = vld [vmem:[%s3580_s7 + $0x10] sm:$0xff]  }
  0x1c   :  { %2430 = vmatpush3.bf16.msra.mxu0 %v2655_v26  ;;  %v2691_v26 = vld [vmem:[%s3574_s1 + $0x120] sm:$0xff]  }
  0x1d   :  { %2452 = vmatpush3.bf16.msra.mxu1 %v2656_v27  ;;  %2431 = vmatprep.subr.bf16.mxu0 %v2657_v28  ;;  %v2692_v27 = vld [vmem:[%s3574_s1 + $0x1a0] sm:$0xff]   ;;  %v2693_v28 = vld [vmem:[%s3574_s1 + $0x168] sm:$0xff]  }
  0x1e   :  { %2453 = vmatprep.subr.bf16.mxu1 %v2658_v30  ;;  %v2695_v30 = vld [vmem:[%s3574_s1 + $0x128] sm:$0xff]   ;;  %v2252_v0 = vld [vmem:[%s3575_s2] ss:$0 sm:$0xff] }
  0x20   :  { %2432 = vmatpush3.bf16.msra.mxu0 %v2659_v31  ;;  %v2696_v31 = vld [vmem:[%s3574_s1 + $0x1a8] sm:$0xff]  }
  0x21   :  { %2454 = vmatpush3.bf16.msra.mxu1 %v2660_v32  ;;  %2461 = vmatprep.subr.bf16.mxu0 %v2673_v46  ;;  %v2697_v32 = vld [vmem:[%s3574_s1 + $0x170] sm:$0xff]   ;;  %v327_v46 = vcombine.low %v282_v43, %v310_v44  ;;  %v2317_v43 = vld [vmem:[%s3577_s4] ss:$0 sm:$0xff] }
  0x22   :  { %2483 = vmatprep.subr.bf16.mxu1 %v2674_v51  ;;  %v2708_v51 = vld [vmem:[%s3576_s3 + $0x18] sm:$0xff]  }
  0x23   :  { %758 = vmatmul.mubr.bf16.vlgmr.msra.gmra.mrb[0].mxu0 %v325_v8 }
  0x24   :  { %799 = vmatmul.mubr.bf16.vlgmr.msra.gmra.mrb[0].mxu1 %v326_v9  ;;  %2462 = vmatpush3.bf16.msra.mxu0 %v2675_v2 }
  0x25   :  { %2484 = vmatpush3.bf16.msra.mxu1 %v2676_v3  ;;  %2463 = vmatprep.subr.bf16.mxu0 %v2677_v10 }
  0x26   :  { %2485 = vmatprep.subr.bf16.mxu1 %v2678_v11  ;;  %839 = vmatprep.mubr.bf16.mxu0 %v331_v13 }
  0x27   :  { %880 = vmatprep.mubr.bf16.mxu1 %v332_v14 }
  0x28   :  { %2464 = vmatpush3.bf16.msra.mxu0 %v2679_v12 }
  0x29   :  { %2486 = vmatpush3.bf16.msra.mxu1 %v2680_v15  ;;  %2465 = vmatprep.subr.bf16.mxu0 %v2681_v16 }
  0x2a   :  { %2487 = vmatprep.subr.bf16.mxu1 %v2682_v17 }
  0x2c   :  { %2466 = vmatpush3.bf16.msra.mxu0 %v2683_v18 }
  0x2d   :  { %2488 = vmatpush3.bf16.msra.mxu1 %v2684_v19  ;;  %2467 = vmatprep.subr.bf16.mxu0 %v2685_v20 }
  0x2e   :  { %2489 = vmatprep.subr.bf16.mxu1 %v2686_v21 }
  0x30   :  { %2468 = vmatpush3.bf16.msra.mxu0 %v2687_v22 }
  0x31   :  { %2490 = vmatpush3.bf16.msra.mxu1 %v2688_v23  ;;  %2469 = vmatprep.subr.bf16.mxu0 %v2689_v24 }
  0x32   :  { %2491 = vmatprep.subr.bf16.mxu1 %v2690_v25 }
  0x34   :  { %2470 = vmatpush3.bf16.msra.mxu0 %v2691_v26 }
  0x35   :  { %2492 = vmatpush3.bf16.msra.mxu1 %v2692_v27  ;;  %2471 = vmatprep.subr.bf16.mxu0 %v2693_v28 }
  0x36   :  { %2493 = vmatprep.subr.bf16.mxu1 %v2694_v29 }
  0x38   :  { %2472 = vmatpush3.bf16.msra.mxu0 %v2695_v30 }
  0x39   :  { %2494 = vmatpush3.bf16.msra.mxu1 %v2696_v31  ;;  %2473 = vmatprep.subr.bf16.mxu0 %v2697_v32 }
  0x3a   :  { %2495 = vmatprep.subr.bf16.mxu1 %v2698_v33 }
  0x3c   :  { %2474 = vmatpush3.bf16.msra.mxu0 %v2699_v34  ;;  %v2719_v34 = vld [vmem:[%s3578_s5 + $0x30] sm:$0xff]  }
  0x3d   :  { %2496 = vmatpush3.bf16.msra.mxu1 %v2700_v36  ;;  %2475 = vmatprep.subr.bf16.mxu0 %v2701_v37  ;;  %v2720_v36 = vld [vmem:[%s3578_s5 + $0x38] sm:$0xff]   ;;  %v2721_v37 = vld [vmem:[%s3580_s7] sm:$0xff]  }
  0x3e   :  { %2497 = vmatprep.subr.bf16.mxu1 %v2702_v40  ;;  %v2724_v40 = vld [vmem:[%s3580_s7 + $0x18] sm:$0xff]  }
  0x40   :  { %2476 = vmatpush3.bf16.msra.mxu0 %v2703_v41  ;;  %v2725_v41 = vld [vmem:[%s3580_s7 + $0x20] sm:$0xff]  }
  0x41   :  { %2498 = vmatpush3.bf16.msra.mxu1 %v2704_v42  ;;  %2541 = vmatprep.subr.bf16.mxu0 %v2826_v49  ;;  %v2726_v42 = vld [vmem:[%s3580_s7 + $0x28] sm:$0xff]  }
  0x42   :  { %2561 = vmatprep.subr.bf16.mxu1 %v2826_v49 }
  0x43   :  { %840 = vmatmul.mubr.bf16.vlgmr.msra.gmra.mrb[4].mxu0 %v327_v46 }
  0x44   :  { %881 = vmatmul.mubr.bf16.vlgmr.msra.gmra.mrb[4].mxu1 %v328_v47  ;;  %2542 = vmatpush3.bf16.msra.mxu0 %v2705_v48 }
  0x45   :  { %2543 = vmatprep.subr.bf16.mxu0 %v2826_v49  ;;  %2557 = vmatprep.mubr.msk.bf16.mxu0 %vm2827_vm0, %v2826_v49 }
  0x46   :  { %2577 = vmatprep.mubr.msk.bf16.mxu1 %vm2827_vm0, %v2826_v49  ;;  %2562 = vmatpush3.bf16.msra.mxu1 %v2713_v56  ;;  %v2729_v56 = vld [vmem:[%s3582_s9] sm:$0xff]  }
  0x47   :  { %2563 = vmatprep.subr.bf16.mxu1 %v2826_v49 }
  0x48   :  { %2544 = vmatpush3.bf16.msra.mxu0 %v2706_v45 }
  0x49   :  { %2545 = vmatprep.subr.bf16.mxu0 %v2826_v49 }
  0x4a   :  { %2564 = vmatpush3.bf16.msra.mxu1 %v2714_v57  ;;  %v2730_v57 = vld [vmem:[%s3582_s9 + $0x8] sm:$0xff]  }
  0x4b   :  { %2565 = vmatprep.subr.bf16.mxu1 %v2826_v49 }
  0x4c   :  { %2546 = vmatpush3.bf16.msra.mxu0 %v2707_v50 }
  0x4d   :  { %2547 = vmatprep.subr.bf16.mxu0 %v2826_v49 }
  0x4e   :  { %2566 = vmatpush3.bf16.msra.mxu1 %v2715_v58  ;;  %v2731_v58 = vld [vmem:[%s3582_s9 + $0x10] sm:$0xff]  }
  0x4f   :  { %2567 = vmatprep.subr.bf16.mxu1 %v2826_v49 }
  0x50   :  { %2548 = vmatpush3.bf16.msra.mxu0 %v2708_v51 }
  0x51   :  { %2549 = vmatprep.subr.bf16.mxu0 %v2826_v49 }
  0x52   :  { %2568 = vmatpush3.bf16.msra.mxu1 %v2716_v59  ;;  %v2732_v59 = vld [vmem:[%s3582_s9 + $0x18] sm:$0xff]  }
  0x53   :  { %2569 = vmatprep.subr.bf16.mxu1 %v2826_v49 }
  0x54   :  { %2550 = vmatpush3.bf16.msra.mxu0 %v2709_v52 }
  0x55   :  { %2551 = vmatprep.subr.bf16.mxu0 %v2826_v49 }
  0x56   :  { %2570 = vmatpush3.bf16.msra.mxu1 %v2717_v60  ;;  %v2733_v60 = vld [vmem:[%s3582_s9 + $0x20] sm:$0xff]  }
  0x57   :  { %2571 = vmatprep.subr.bf16.mxu1 %v2826_v49 }
  0x58   :  { %2552 = vmatpush3.bf16.msra.mxu0 %v2710_v53 }
  0x59   :  { %2553 = vmatprep.subr.bf16.mxu0 %v2826_v49 }
  0x5a   :  { %2572 = vmatpush3.bf16.msra.mxu1 %v2718_v61  ;;  %v2734_v61 = vld [vmem:[%s3582_s9 + $0x28] sm:$0xff]  }
  0x5b   :  { %2573 = vmatprep.subr.bf16.mxu1 %v2826_v49 }
  0x5c   :  { %2554 = vmatpush3.bf16.msra.mxu0 %v2711_v54  ;;  %v2727_v54 = vld [vmem:[%s3580_s7 + $0x30] sm:$0xff]  }
  0x5d   :  { %2555 = vmatprep.subr.bf16.mxu0 %v2826_v49 }
  0x5e   :  { %2574 = vmatpush3.bf16.msra.mxu1 %v2719_v34 }
  0x5f   :  { %2575 = vmatprep.subr.bf16.mxu1 %v2826_v49 }
  0x60   :  { %2556 = vmatpush3.bf16.msra.mxu0 %v2712_v55  ;;  %v2728_v55 = vld [vmem:[%s3580_s7 + $0x38] sm:$0xff]  }
  0x61   :  { %2581 = vmatprep.subr.bf16.mxu0 %v2826_v49 }
  0x62   :  { %2576 = vmatpush3.bf16.msra.mxu1 %v2720_v36  ;;  %v2335_v36 = vld [vmem:[%s3581_s8] ss:$0 sm:$0xff] }
  0x63   :  { %2601 = vmatprep.subr.bf16.mxu1 %v2826_v49 }
  0xf6   :  { %v2433_v62 = vpop.f32.mrb[0].mxu0 }
  0xf7   :  { %v2455_v63 = vpop.f32.mrb[0].mxu1  ;;  %v2434_v1 = vpop.f32.mrb[1].mxu0 }
  0xf8   :  { %v2456_v2 = vpop.f32.mrb[1].mxu1  ;;  %v2435_v3 = vadd.f32 %v2434_v1, %v2433_v62  ;;  %v2436_v5 = vpop.f32.mrb[2].mxu0  ;;  %v2326_v62 = vld [vmem:[%s3579_s6] ss:$0 sm:$0xff] }
  0xf9   :  { %v2457_v4 = vadd.f32 %v2456_v2, %v2455_v63  ;;  %v2458_v6 = vpop.f32.mrb[2].mxu1  ;;  %v2437_v7 = vpop.f32.mrb[3].mxu0 }
  0xfa   :  { %v2459_v8 = vpop.f32.mrb[3].mxu1  ;;  %v760_v9 = vadd.f32 %v2435_v3, %v2252_v0  ;;  %v2438_v10 = vadd.f32 %v2437_v7, %v2436_v5  ;;  %v2736_v7 = vld [vmem:[%s3582_s9 + $0x38] sm:$0xff]  }
  0xfb   :  { %v2460_v11 = vadd.f32 %v2459_v8, %v2458_v6  ;;  %v2735_v6 = vld [vmem:[%s3582_s9 + $0x30] sm:$0xff]   ;;  %v1350_v8 = vld [vmem:[%s3584_s11] sm:$0xff] }
  0xfc   :  { %v801_v12 = vadd.f32 %v2457_v4, %v760_v9  ;;  %v763_v13 = vadd.f32 %v2438_v10, %v2252_v0  ;;  %v1354_v9 = vld [vmem:[%s3584_s11 + $0x20] sm:$0xff]  ;;  %v1351_v10 = vld [vmem:[%s3584_s11 + $0x8] sm:$0xff] }
  0xfe   :  { %v804_v14 = vadd.f32 %v2460_v11, %v763_v13  ;;  %v2353_v11 = vcombine.low %v1350_v8, %v1354_v9  ;;  %v1358_v13 = vld [vmem:[%s3584_s11 + $0x40] sm:$0xff] }
 0x116   :  { %v2477_v15 = vpop.f32.mrb[4].mxu0 }
 0x117   :  { %v2499_v16 = vpop.f32.mrb[4].mxu1  ;;  %v2478_v17 = vpop.f32.mrb[5].mxu0 }
 0x118   :  { %v2500_v18 = vpop.f32.mrb[5].mxu1  ;;  %v2479_v19 = vadd.f32 %v2478_v17, %v2477_v15  ;;  %v2480_v21 = vpop.f32.mrb[6].mxu0 }
 0x119   :  { %v2501_v20 = vadd.f32 %v2500_v18, %v2499_v16  ;;  %v2502_v22 = vpop.f32.mrb[6].mxu1  ;;  %v2481_v23 = vpop.f32.mrb[7].mxu0 }
 0x11a   :  { %v2503_v24 = vpop.f32.mrb[7].mxu1  ;;  %v842_v25 = vadd.f32 %v2479_v19, %v801_v12  ;;  %v2482_v26 = vadd.f32 %v2481_v23, %v2480_v21  ;;  %v2354_v12 = vcombine.high %v1350_v8, %v1354_v9  ;;  %v1366_v19 = vld [vmem:[%s3584_s11 + $0x80] sm:$0xff] }
 0x11b   :  { %v2504_v27 = vadd.f32 %v2503_v24, %v2502_v22  ;;  %v1374_v23 = vld [vmem:[%s3584_s11 + $0xc0] sm:$0xff] }
 0x11c   :  { %v883_v28 = vadd.f32 %v2501_v20, %v842_v25  ;;  %v845_v29 = vadd.f32 %v2482_v26, %v804_v14  ;;  %v1362_v14 = vld [vmem:[%s3584_s11 + $0x60] sm:$0xff] }
 0x11d   :  { %v2362_v17 = vcombine.high %v1358_v13, %v1362_v14  ;;  %v2361_v18 = vcombine.low %v1358_v13, %v1362_v14  ;;  %v1370_v20 = vld [vmem:[%s3584_s11 + $0xa0] sm:$0xff]  ;;  %v1411_v14 = vld [vmem:[%s3584_s11 + $0x1e8] sm:$0xff] }
 0x11e   :  { %v886_v30 = vadd.f32 %v2504_v27, %v845_v29  ;;  %v889_v31 = vmax.f32 %v883_v28, 0.0  ;;  %v2370_v21 = vcombine.high %v1366_v19, %v1370_v20  ;;  %v2369_v22 = vcombine.low %v1366_v19, %v1370_v20  ;;  %v1378_v24 = vld [vmem:[%s3584_s11 + $0xe0] sm:$0xff]  ;;  %v1356_v19 = vld [vmem:[%s3584_s11 + $0x30] sm:$0xff]  ;;  %v1353_v20 = vld [vmem:[%s3584_s11 + $0x18] sm:$0xff] }
 0x11f   :  { %v2378_v25 = vcombine.high %v1374_v23, %v1378_v24  ;;  %v2377_v26 = vcombine.low %v1374_v23, %v1378_v24  ;;  %v1382_v27 = vld [vmem:[%s3584_s11 + $0x100] sm:$0xff] }
 0x120   :  { %v890_v32 = vmax.f32 %v886_v30, 0.0  ;;  %v1386_v28 = vld [vmem:[%s3584_s11 + $0x120] sm:$0xff] }
 0x121   :  { %v2386_v29 = vcombine.high %v1382_v27, %v1386_v28  ;;  %v2385_v30 = vcombine.low %v1382_v27, %v1386_v28  ;;  %v2344_v27 = vld [vmem:[%s3583_s10] ss:$0 sm:$0xff] }
 0x122   :  { %v891_v33 = vpack.c.bf16 %v890_v32, %v889_v31  ;;  %v1390_v31 = vld [vmem:[%s3584_s11 + $0x140] sm:$0xff] }
 0x123   :  { %v1394_v32 = vld [vmem:[%s3584_s11 + $0x160] sm:$0xff] }
 0x124   :  { %2558 = vmatmul.mubr.bf16.vlgmr.msra.gmra.mrb[8].mxu0 %v891_v33  ;;  %v2394_v33 = vcombine.high %v1390_v31, %v1394_v32  ;;  %v2393_v34 = vcombine.low %v1390_v31, %v1394_v32 }
 0x125   :  { %2597 = vmatprep.mubr.msk.bf16.mxu0 %vm2827_vm0, %v2826_v49  ;;  %2582 = vmatpush3.bf16.msra.mxu0 %v2721_v37 }
 0x126   :  { %2583 = vmatprep.subr.bf16.mxu0 %v2826_v49 }
 0x129   :  { %2584 = vmatpush3.bf16.msra.mxu0 %v2722_v38 }
 0x12a   :  { %2585 = vmatprep.subr.bf16.mxu0 %v2826_v49 }
 0x12d   :  { %2586 = vmatpush3.bf16.msra.mxu0 %v2723_v39 }
 0x12e   :  { %2587 = vmatprep.subr.bf16.mxu0 %v2826_v49 }
 0x131   :  { %2588 = vmatpush3.bf16.msra.mxu0 %v2724_v40 }
 0x132   :  { %2589 = vmatprep.subr.bf16.mxu0 %v2826_v49 }
 0x135   :  { %2590 = vmatpush3.bf16.msra.mxu0 %v2725_v41 }
 0x136   :  { %2591 = vmatprep.subr.bf16.mxu0 %v2826_v49 }
 0x139   :  { %2592 = vmatpush3.bf16.msra.mxu0 %v2726_v42 }
 0x13a   :  { %2593 = vmatprep.subr.bf16.mxu0 %v2826_v49 }
 0x13d   :  { %2594 = vmatpush3.bf16.msra.mxu0 %v2727_v54  ;;  %v1375_v54 = vld [vmem:[%s3584_s11 + $0xc8] sm:$0xff] }
 0x13e   :  { %2595 = vmatprep.subr.bf16.mxu0 %v2826_v49 }
 0x141   :  { %2596 = vmatpush3.bf16.msra.mxu0 %v2728_v55  ;;  %v1379_v55 = vld [vmem:[%s3584_s11 + $0xe8] sm:$0xff] }
 0x142   :  { %1776 = vmatprep.subr.bf16.mxu0 %v2354_v12  ;;  %v1410_v12 = vld [vmem:[%s3584_s11 + $0x1e0] sm:$0xff] }
 0x1f7   :  { %v997_v44 = vpop.f32.mrb[8].mxu0 }
 0x1f8   :  { %v998_v46 = vadd.f32 %v2317_v43, %v997_v44  ;;  %v2559_v47 = vpop.f32.mrb[9].mxu0  ;;  %v1363_v44 = vld [vmem:[%s3584_s11 + $0x68] sm:$0xff] }
 0x1f9   :  { %v1000_v48 = vpop.f32.mrb[10].mxu0 }
 0x1fa   :  { %v1001_v45 = vadd.f32 %v2317_v43, %v1000_v48  ;;  %v2560_v50 = vpop.f32.mrb[11].mxu0  ;;  %v1004_v51 = vmax.f32 %v998_v46, 0.0  ;;  %v1359_v43 = vld [vmem:[%s3584_s11 + $0x48] sm:$0xff] }
 0x1fb   :  { %v1367_v50 = vld [vmem:[%s3584_s11 + $0x88] sm:$0xff] }
 0x1fc   :  { %v1005_v52 = vmax.f32 %v1001_v45, 0.0  ;;  %v2364_v45 = vcombine.high %v1359_v43, %v1363_v44 }
 0x1fe   :  { %v1006_v53 = vpack.c.bf16 %v1005_v52, %v1004_v51  ;;  %v1371_v51 = vld [vmem:[%s3584_s11 + $0xa8] sm:$0xff]  ;;  %v2363_v52 = vcombine.low %v1359_v43, %v1363_v44  ;;  %v1368_v44 = vld [vmem:[%s3584_s11 + $0x90] sm:$0xff] }
 0x200   :  { %2578 = vmatmul.mubr.bf16.vlgmr.msra.gmra.mrb[8].mxu1 %v1006_v53  ;;  %v2372_v53 = vcombine.high %v1367_v50, %v1371_v51 }
 0x201   :  { %2617 = vmatprep.mubr.msk.bf16.mxu1 %vm2827_vm0, %v2826_v49  ;;  %2602 = vmatpush3.bf16.msra.mxu1 %v2729_v56  ;;  %v2371_v56 = vcombine.low %v1367_v50, %v1371_v51 }
 0x202   :  { %2603 = vmatprep.subr.bf16.mxu1 %v2826_v49 }
 0x205   :  { %2604 = vmatpush3.bf16.msra.mxu1 %v2730_v57  ;;  %v2380_v57 = vcombine.high %v1375_v54, %v1379_v55 }
 0x206   :  { %2605 = vmatprep.subr.bf16.mxu1 %v2826_v49 }
 0x209   :  { %2606 = vmatpush3.bf16.msra.mxu1 %v2731_v58  ;;  %v1383_v58 = vld [vmem:[%s3584_s11 + $0x108] sm:$0xff] }
 0x20a   :  { %2607 = vmatprep.subr.bf16.mxu1 %v2826_v49 }
 0x20d   :  { %2608 = vmatpush3.bf16.msra.mxu1 %v2732_v59  ;;  %v1387_v59 = vld [vmem:[%s3584_s11 + $0x128] sm:$0xff] }
 0x20e   :  { %2609 = vmatprep.subr.bf16.mxu1 %v2826_v49 }
 0x211   :  { %2610 = vmatpush3.bf16.msra.mxu1 %v2733_v60  ;;  %v2379_v60 = vcombine.low %v1375_v54, %v1379_v55  ;;  %v1380_v54 = vld [vmem:[%s3584_s11 + $0xf0] sm:$0xff]  ;;  %v1377_v55 = vld [vmem:[%s3584_s11 + $0xd8] sm:$0xff] }
 0x212   :  { %2611 = vmatprep.subr.bf16.mxu1 %v2826_v49 }
 0x215   :  { %2612 = vmatpush3.bf16.msra.mxu1 %v2734_v61  ;;  %v2388_v61 = vcombine.high %v1383_v58, %v1387_v59 }
 0x216   :  { %2613 = vmatprep.subr.bf16.mxu1 %v2826_v49 }
 0x219   :  { %2614 = vmatpush3.bf16.msra.mxu1 %v2735_v6 }
 0x21a   :  { %2615 = vmatprep.subr.bf16.mxu1 %v2826_v49  ;;  %v1355_v49 = vld [vmem:[%s3584_s11 + $0x28] sm:$0xff] }
 0x21b   :  { %v2355_v15 = vcombine.low %v1351_v10, %v1355_v49  ;;  %v2356_v16 = vcombine.high %v1351_v10, %v1355_v49  ;;  %v1407_v49 = vld [vmem:[%s3584_s11 + $0x1c8] sm:$0xff] }
 0x21d   :  { %2616 = vmatpush3.bf16.msra.mxu1 %v2736_v7  ;;  %v1403_v7 = vld [vmem:[%s3584_s11 + $0x1a8] sm:$0xff] }
 0x21e   :  { %1819 = vmatprep.subr.bf16.mxu1 %v2356_v16  ;;  %v2411_v16 = vcombine.low %v1407_v49, %v1411_v14 }
 0x2d3   :  { %v1112_v63 = vpop.f32.mrb[8].mxu1 }
 0x2d4   :  { %v2579_v0 = vpop.f32.mrb[9].mxu1  ;;  %v1113_v2 = vadd.f32 %v2326_v62, %v1112_v63  ;;  %v1395_v63 = vld [vmem:[%s3584_s11 + $0x168] sm:$0xff] }
 0x2d5   :  { %v1115_v1 = vpop.f32.mrb[10].mxu1  ;;  %v2387_v0 = vcombine.low %v1383_v58, %v1387_v59 }
 0x2d6   :  { %v1116_v3 = vadd.f32 %v2326_v62, %v1115_v1  ;;  %v2580_v4 = vpop.f32.mrb[11].mxu1  ;;  %v1391_v62 = vld [vmem:[%s3584_s11 + $0x148] sm:$0xff] }
 0x2d7   :  { %v2396_v1 = vcombine.high %v1391_v62, %v1395_v63  ;;  %v1402_v4 = vld [vmem:[%s3584_s11 + $0x1a0] sm:$0xff] }
 0x2d8   :  { %v1119_v5 = vpack.c.bf16 %v1116_v3, %v1113_v2  ;;  %v2395_v2 = vcombine.low %v1391_v62, %v1395_v63  ;;  %v1398_v3 = vld [vmem:[%s3584_s11 + $0x180] sm:$0xff]  ;;  %v1388_v62 = vld [vmem:[%s3584_s11 + $0x130] sm:$0xff]  ;;  %v1385_v63 = vld [vmem:[%s3584_s11 + $0x118] sm:$0xff] }
 0x2d9   :  { %v2402_v6 = vcombine.high %v1398_v3, %v1402_v4  ;;  %v2401_v8 = vcombine.low %v1398_v3, %v1402_v4 }
 0x2da   :  { %2598 = vmatmul.mubr.bf16.vlgmr.msra.gmra.mrb[12].mxu0 %v1119_v5  ;;  %v1399_v5 = vld [vmem:[%s3584_s11 + $0x188] sm:$0xff] }
 0x2db   :  { %1777 = vmatpush1.bf16.msra.mxu0 %v2353_v11  ;;  %v2403_v9 = vcombine.low %v1399_v5, %v1403_v7  ;;  %v2404_v10 = vcombine.high %v1399_v5, %v1403_v7  ;;  %v1406_v11 = vld [vmem:[%s3584_s11 + $0x1c0] sm:$0xff]  ;;  %v1392_v5 = vld [vmem:[%s3584_s11 + $0x150] sm:$0xff]  ;;  %v1393_v7 = vld [vmem:[%s3584_s11 + $0x158] sm:$0xff] }
 0x2dc   :  { %1778 = vmatprep.subr.bf16.mxu0 %v2362_v17  ;;  %v2410_v13 = vcombine.high %v1406_v11, %v1410_v12  ;;  %v2412_v17 = vcombine.high %v1407_v49, %v1411_v14  ;;  %v1400_v49 = vld [vmem:[%s3584_s11 + $0x190] sm:$0xff]  ;;  %v1401_v14 = vld [vmem:[%s3584_s11 + $0x198] sm:$0xff] }
 0x2df   :  { %1779 = vmatpush1.bf16.msra.mxu0 %v2361_v18  ;;  %v1352_v18 = vld [vmem:[%s3584_s11 + $0x10] sm:$0xff] }
 0x2e0   :  { %1780 = vmatprep.subr.bf16.mxu0 %v2370_v21  ;;  %v2358_v21 = vcombine.high %v1352_v18, %v1356_v19  ;;  %v2357_v23 = vcombine.low %v1352_v18, %v1356_v19 }
 0x2e3   :  { %1781 = vmatpush1.bf16.msra.mxu0 %v2369_v22  ;;  %v1357_v22 = vld [vmem:[%s3584_s11 + $0x38] sm:$0xff] }
 0x2e4   :  { %1782 = vmatprep.subr.bf16.mxu0 %v2378_v25  ;;  %v2359_v24 = vcombine.low %v1353_v20, %v1357_v22  ;;  %v2360_v25 = vcombine.high %v1353_v20, %v1357_v22  ;;  %v1408_v20 = vld [vmem:[%s3584_s11 + $0x1d0] sm:$0xff]  ;;  %v1409_v22 = vld [vmem:[%s3584_s11 + $0x1d8] sm:$0xff] }
 0x2e7   :  { %1783 = vmatpush1.bf16.msra.mxu0 %v2377_v26  ;;  %v2828_v26 = vmov 0  }
 0x2e8   :  { %1784 = vmatprep.subr.bf16.mxu0 %v2386_v29  ;;  %1808 = vmatprep.mubr.bf16.mxu0 %v2828_v26 }
 0x2eb   :  { %1785 = vmatpush1.bf16.msra.mxu0 %v2385_v30 }
 0x2ec   :  { %1786 = vmatprep.subr.bf16.mxu0 %v2394_v33 }
 0x2ef   :  { %1787 = vmatpush1.bf16.msra.mxu0 %v2393_v34  ;;  %v1360_v34 = vld [vmem:[%s3584_s11 + $0x50] sm:$0xff] }
 0x2f0   :  { %1788 = vmatprep.subr.bf16.mxu0 %v2402_v6  ;;  %v1396_v6 = vld [vmem:[%s3584_s11 + $0x170] sm:$0xff] }
 0x2f3   :  { %1789 = vmatpush1.bf16.msra.mxu0 %v2401_v8  ;;  %v1397_v8 = vld [vmem:[%s3584_s11 + $0x178] sm:$0xff] }
 0x2f4   :  { %1790 = vmatprep.subr.bf16.mxu0 %v2410_v13  ;;  %v1404_v13 = vld [vmem:[%s3584_s11 + $0x1b0] sm:$0xff] }
 0x2f5   :  { %v2406_v18 = vcombine.high %v1400_v49, %v1404_v13 }
 0x3ad   :  { %v1225_v37 = vpop.f32.mrb[12].mxu0 }
 0x3ae   :  { %v1226_v38 = vadd.f32 %v2335_v36, %v1225_v37  ;;  %v2599_v39 = vpop.f32.mrb[13].mxu0  ;;  %v1361_v37 = vld [vmem:[%s3584_s11 + $0x58] sm:$0xff] }
 0x3af   :  { %v1228_v40 = vpop.f32.mrb[14].mxu0 }
 0x3b0   :  { %v1229_v41 = vadd.f32 %v2335_v36, %v1228_v40  ;;  %v2600_v42 = vpop.f32.mrb[15].mxu0  ;;  %v1232_v46 = vmax.f32 %v1226_v38, 0.0  ;;  %v1364_v36 = vld [vmem:[%s3584_s11 + $0x70] sm:$0xff]  ;;  %v1365_v38 = vld [vmem:[%s3584_s11 + $0x78] sm:$0xff] }
 0x3b1   :  { %v2366_v42 = vcombine.high %v1360_v34, %v1364_v36  ;;  %v2368_v43 = vcombine.high %v1361_v37, %v1365_v38  ;;  %v2367_v50 = vcombine.low %v1361_v37, %v1365_v38 }
 0x3b2   :  { %v1233_v47 = vmax.f32 %v1229_v41, 0.0 }
 0x3b4   :  { %v1234_v48 = vpack.c.bf16 %v1233_v47, %v1232_v46  ;;  %v1372_v46 = vld [vmem:[%s3584_s11 + $0xb0] sm:$0xff]  ;;  %v1369_v47 = vld [vmem:[%s3584_s11 + $0x98] sm:$0xff] }
 0x3b5   :  { %v2374_v51 = vcombine.high %v1368_v44, %v1372_v46 }
 0x3b6   :  { %2618 = vmatmul.mubr.bf16.vlgmr.msra.gmra.mrb[12].mxu1 %v1234_v48  ;;  %v1373_v48 = vld [vmem:[%s3584_s11 + $0xb8] sm:$0xff] }
 0x3b7   :  { %1820 = vmatpush1.bf16.msra.mxu1 %v2355_v15  ;;  %v2409_v15 = vcombine.low %v1406_v11, %v1410_v12  ;;  %1851 = vmatprep.mubr.bf16.mxu1 %v2828_v26  ;;  %v2375_v58 = vcombine.low %v1369_v47, %v1373_v48  ;;  %v2398_v11 = vcombine.high %v1392_v5, %v1396_v6 }
 0x3b8   :  { %1821 = vmatprep.subr.bf16.mxu1 %v2364_v45  ;;  %v2365_v45 = vcombine.low %v1360_v34, %v1364_v36  ;;  %v2400_v12 = vcombine.high %v1393_v7, %v1397_v8  ;;  %v1430_v34 = vsub.s32 3, %v2999_v35 }
 0x3b9   :  { %1791 = vmatpush1.bf16.msra.mxu0 %v2409_v15  ;;  %v1405_v15 = vld [vmem:[%s3584_s11 + $0x1b8] sm:$0xff] }
 0x3ba   :  { %1862 = vmatprep.subr.bf16.mxu0 %v2358_v21  ;;  %v2408_v19 = vcombine.high %v1401_v14, %v1405_v15  ;;  %v1412_v21 = vld [vmem:[%s3584_s11 + $0x1f0] sm:$0xff] }
 0x3bb   :  { %1822 = vmatpush1.bf16.msra.mxu1 %v2363_v52  ;;  %v2376_v52 = vcombine.high %v1369_v47, %v1373_v48 }
 0x3bc   :  { %1823 = vmatprep.subr.bf16.mxu1 %v2372_v53  ;;  %v1376_v53 = vld [vmem:[%s3584_s11 + $0xd0] sm:$0xff] }
 0x3bd   :  { %v2382_v59 = vcombine.high %v1376_v53, %v1380_v54 }
 0x3bf   :  { %1824 = vmatpush1.bf16.msra.mxu1 %v2371_v56  ;;  %v1381_v56 = vld [vmem:[%s3584_s11 + $0xf8] sm:$0xff] }
 0x3c0   :  { %1825 = vmatprep.subr.bf16.mxu1 %v2380_v57  ;;  %v2373_v57 = vcombine.low %v1368_v44, %v1372_v46 }
 0x3c3   :  { %1826 = vmatpush1.bf16.msra.mxu1 %v2379_v60  ;;  %v2384_v60 = vcombine.high %v1377_v55, %v1381_v56 }
 0x3c4   :  { %1827 = vmatprep.subr.bf16.mxu1 %v2388_v61  ;;  %v1384_v61 = vld [vmem:[%s3584_s11 + $0x110] sm:$0xff] }
 0x3c5   :  { %v2390_v3 = vcombine.high %v1384_v61, %v1388_v62 }
 0x3c7   :  { %1828 = vmatpush1.bf16.msra.mxu1 %v2387_v0  ;;  %v1389_v0 = vld [vmem:[%s3584_s11 + $0x138] sm:$0xff] }
 0x3c8   :  { %1829 = vmatprep.subr.bf16.mxu1 %v2396_v1  ;;  %v2381_v1 = vcombine.low %v1376_v53, %v1380_v54  ;;  %v2392_v4 = vcombine.high %v1385_v63, %v1389_v0 }
 0x3cb   :  { %1830 = vmatpush1.bf16.msra.mxu1 %v2395_v2  ;;  %v2383_v2 = vcombine.low %v1377_v55, %v1381_v56 }
 0x3cc   :  { %1831 = vmatprep.subr.bf16.mxu1 %v2404_v10  ;;  %v2391_v10 = vcombine.low %v1385_v63, %v1389_v0 }
 0x3cf   :  { %1832 = vmatpush1.bf16.msra.mxu1 %v2403_v9  ;;  %v2389_v9 = vcombine.low %v1384_v61, %v1388_v62 }
 0x3d0   :  { %1833 = vmatprep.subr.bf16.mxu1 %v2412_v17  ;;  %v2399_v17 = vcombine.low %v1393_v7, %v1397_v8 }
 0x3d3   :  { %1834 = vmatpush1.bf16.msra.mxu1 %v2411_v16  ;;  %v2397_v16 = vcombine.low %v1392_v5, %v1396_v6 }
 0x3d4   :  { %1905 = vmatprep.subr.bf16.mxu1 %v2360_v25  ;;  %v2407_v25 = vcombine.low %v1401_v14, %v1405_v15 }
 0x489   :  { %v1340_v28 = vpop.f32.mrb[12].mxu1 }
 0x48a   :  { %v1341_v29 = vadd.f32 %v2344_v27, %v1340_v28  ;;  %v2619_v30 = vpop.f32.mrb[13].mxu1  ;;  %v2413_v28 = vcombine.low %v1408_v20, %v1412_v21 }
 0x48b   :  { %v1343_v31 = vpop.f32.mrb[14].mxu1  ;;  %v1418_v30 = vsub.s32 0, %v2999_v35 }
 0x48c   :  { %v1344_v32 = vadd.f32 %v2344_v27, %v1343_v31  ;;  %v2620_v33 = vpop.f32.mrb[15].mxu1  ;;  %v1347_v39 = vmax.f32 %v1341_v29, 0.0  ;;  %v1426_v31 = vsub.s32 2, %v2999_v35 }
 0x48d   :  { %v1422_v33 = vsub.s32 1, %v2999_v35 }
 0x48e   :  { %v1348_v40 = vmax.f32 %v1344_v32, 0.0  ;;  %v3510_v32 = vld [vmem:[%s3585_s12] sm:$0xff] }
 0x48f   :  { %v1419_v36 = vrot.slane %v3510_v32, %v1418_v30  ;;  %v1427_v37 = vrot.slane %v3510_v32, %v1426_v31  ;;  %v1423_v38 = vrot.slane %v3510_v32, %v1422_v33 }
 0x490   :  { %v3427_v41 = vpack.c.bf16 %v1348_v40, %v1347_v39  ;;  %v1431_v39 = vrot.slane %v3510_v32, %v1430_v34 }
 0x492   :  { %1809 = vmatmul.mubr.bf16.vlgmr.msra.gmra.mrb[16].mxu0 %v3427_v41  ;;  %1852 = vmatmul.mubr.bf16.vlgmr.msra.gmra.mrb[16].mxu1 %v3427_v41 }
 0x493   :  { %1863 = vmatpush1.bf16.msra.mxu0 %v2357_v23  ;;  %1906 = vmatpush1.bf16.msra.mxu1 %v2359_v24  ;;  %v1413_v23 = vld [vmem:[%s3584_s11 + $0x1f8] sm:$0xff]  ;;  %v2405_v24 = vcombine.low %v1400_v49, %v1404_v13 }
 0x494   :  { %1864 = vmatprep.subr.bf16.mxu0 %v2366_v42  ;;  %1907 = vmatprep.subr.bf16.mxu1 %v2368_v43  ;;  %v2416_v27 = vcombine.high %v1409_v22, %v1413_v23  ;;  %v2415_v29 = vcombine.low %v1409_v22, %v1413_v23  ;;  %v2829_v22 = vmov 1983009808  }
 0x495   :  { %1894 = vmatprep.mubr.bf16.mxu0 %v2828_v26  ;;  %1937 = vmatprep.mubr.bf16.mxu1 %v2828_v26  ;;  %v2414_v26 = vcombine.high %v1408_v20, %v1412_v21  ;;  %v2065_v23 = vunpack.c.l.s4 %v2829_v22 }
 0x497   :  { %1865 = vmatpush1.bf16.msra.mxu0 %v2365_v45  ;;  %1908 = vmatpush1.bf16.msra.mxu1 %v2367_v50  ;;  %v2066_v30 = vunpack.c.0.s8 %v2065_v23 }
 0x498   :  { %1866 = vmatprep.subr.bf16.mxu0 %v2374_v51  ;;  %1909 = vmatprep.subr.bf16.mxu1 %v2376_v52 }
 0x49b   :  { %1867 = vmatpush1.bf16.msra.mxu0 %v2373_v57  ;;  %1910 = vmatpush1.bf16.msra.mxu1 %v2375_v58 }
 0x49c   :  { %1868 = vmatprep.subr.bf16.mxu0 %v2382_v59  ;;  %1911 = vmatprep.subr.bf16.mxu1 %v2384_v60 }
 0x49f   :  { %1869 = vmatpush1.bf16.msra.mxu0 %v2381_v1  ;;  %1912 = vmatpush1.bf16.msra.mxu1 %v2383_v2 }
 0x4a0   :  { %1870 = vmatprep.subr.bf16.mxu0 %v2390_v3  ;;  %1913 = vmatprep.subr.bf16.mxu1 %v2392_v4 }
 0x4a3   :  { %1871 = vmatpush1.bf16.msra.mxu0 %v2389_v9  ;;  %1914 = vmatpush1.bf16.msra.mxu1 %v2391_v10 }
 0x4a4   :  { %1872 = vmatprep.subr.bf16.mxu0 %v2398_v11  ;;  %1915 = vmatprep.subr.bf16.mxu1 %v2400_v12 }
 0x4a7   :  { %1873 = vmatpush1.bf16.msra.mxu0 %v2397_v16  ;;  %1916 = vmatpush1.bf16.msra.mxu1 %v2399_v17 }
 0x4a8   :  { %1874 = vmatprep.subr.bf16.mxu0 %v2406_v18  ;;  %1917 = vmatprep.subr.bf16.mxu1 %v2408_v19 }
 0x4ab   :  { %1875 = vmatpush1.bf16.msra.mxu0 %v2405_v24  ;;  %1918 = vmatpush1.bf16.msra.mxu1 %v2407_v25 }
 0x4ac   :  { %1876 = vmatprep.subr.bf16.mxu0 %v2414_v26  ;;  %1919 = vmatprep.subr.bf16.mxu1 %v2416_v27  ;;  %v1434_v26 = vsub.s32 4, %v2999_v35  ;;  %v1442_v27 = vsub.s32 6, %v2999_v35 }
 0x4ae   :  { %v3523_v31 = vrot.slane %v3510_v32, %v1434_v26  ;;  %v3526_v33 = vrot.slane %v3510_v32, %v1442_v27 }
 0x4af   :  { %1877 = vmatpush1.bf16.msra.mxu0 %v2413_v28  ;;  %1920 = vmatpush1.bf16.msra.mxu1 %v2415_v29  ;;  %v1438_v28 = vsub.s32 5, %v2999_v35  ;;  %v1446_v29 = vsub.s32 7, %v2999_v35 }
 0x4b2   :  { %1895 = vmatmul.mubr.bf16.vlgmr.msra.gmra.mrb[20].mxu0 %v3427_v41  ;;  %1938 = vmatmul.mubr.bf16.vlgmr.msra.gmra.mrb[20].mxu1 %v3427_v41 }
 0x565   :  { %v1810_v40 = vpop.f32.mrb[16].mxu0  ;;  %v1853_v41 = vpop.f32.mrb[16].mxu1 }
 0x566   :  { %v1811_v42 = vadd.f32 %v1810_v40, %v1419_v36  ;;  %v1854_v43 = vadd.f32 %v1853_v41, %v1427_v37  ;;  %v1812_v44 = vpop.f32.mrb[17].mxu0  ;;  %v1855_v46 = vpop.f32.mrb[17].mxu1 }
 0x567   :  { %v1813_v47 = vadd.f32 %v1812_v44, %v1423_v38  ;;  %v1856_v48 = vadd.f32 %v1855_v46, %v1431_v39  ;;  %v1814_v45 = vpop.f32.mrb[18].mxu0  ;;  %v1857_v50 = vpop.f32.mrb[18].mxu1 }
 0x568   :  { %v1948_v51 = vsub.f32 0.0, %v1811_v42  ;;  %v1950_v52 = vsub.f32 0.0, %v1854_v43  ;;  %v1815_v53 = vadd.f32 %v1814_v45, %v1419_v36  ;;  %v1858_v54 = vadd.f32 %v1857_v50, %v1427_v37  ;;  %v1816_v55 = vpop.f32.mrb[19].mxu0  ;;  %v1859_v56 = vpop.f32.mrb[19].mxu1 }
 0x569   :  { %v1949_v57 = vsub.f32 0.0, %v1813_v47  ;;  %v1951_v58 = vsub.f32 0.0, %v1856_v48  ;;  %v1817_v59 = vadd.f32 %v1816_v55, %v1423_v38  ;;  %v1860_v60 = vadd.f32 %v1859_v56, %v1431_v39 }
 0x56a   :  { %v1964_v61 = vmul.f32 1.442695, %v1948_v51  ;;  %v1968_v62 = vmul.f32 1.442695, %v1950_v52  ;;  %v1956_v63 = vsub.f32 0.0, %v1815_v53  ;;  %v1958_v0 = vsub.f32 0.0, %v1858_v54 }
 0x56b   :  { %v1966_v1 = vmul.f32 1.442695, %v1949_v57  ;;  %v1970_v2 = vmul.f32 1.442695, %v1951_v58  ;;  %v1957_v3 = vsub.f32 0.0, %v1817_v59  ;;  %v1959_v4 = vsub.f32 0.0, %v1860_v60 }
 0x56c   :  { %2737 = vpow2.f32 %v1964_v61  ;;  %v1980_v5 = vmul.f32 1.442695, %v1956_v63  ;;  %v1984_v6 = vmul.f32 1.442695, %v1958_v0  ;;  %v3529_v36 = vrot.slane %v3510_v32, %v1438_v28 }
 0x56d   :  { %2739 = vpow2.f32 %v1968_v62  ;;  %v1982_v7 = vmul.f32 1.442695, %v1957_v3  ;;  %v1986_v8 = vmul.f32 1.442695, %v1959_v4  ;;  %v3532_v37 = vrot.slane %v3510_v32, %v1446_v29 }
 0x56e   :  { %2741 = vpow2.f32 %v1966_v1  ;;  %v3535_v47 = vsub.s32 %v2066_v30, %v2999_v35 }
 0x56f   :  { %2743 = vpow2.f32 %v1970_v2 }
 0x570   :  { %2745 = vpow2.f32 %v1980_v5 }
 0x571   :  { %2747 = vpow2.f32 %v1984_v6 }
 0x572   :  { %2749 = vpow2.f32 %v1982_v7 }
 0x573   :  { %2751 = vpow2.f32 %v1986_v8 }
 0x576   :  { %v2738_v9 = vpop.eup %2737 }
 0x577   :  { %v2740_v10 = vpop.eup %2739  ;;  %v1996_v11 = vadd.f32 1.0, %v2738_v9 }
 0x578   :  { %v2742_v12 = vpop.eup %2741  ;;  %v1998_v49 = vadd.f32 1.0, %v2740_v10 }
 0x579   :  { %v2744_v13 = vpop.eup %2743  ;;  %2753 = vrcp.f32 %v1996_v11  ;;  %v1997_v14 = vadd.f32 1.0, %v2742_v12 }
 0x57a   :  { %v2746_v15 = vpop.eup %2745  ;;  %2755 = vrcp.f32 %v1998_v49  ;;  %v1999_v16 = vadd.f32 1.0, %v2744_v13 }
 0x57b   :  { %v2748_v17 = vpop.eup %2747  ;;  %2757 = vrcp.f32 %v1997_v14  ;;  %v2004_v18 = vadd.f32 1.0, %v2746_v15 }
 0x57c   :  { %v2750_v19 = vpop.eup %2749  ;;  %2759 = vrcp.f32 %v1999_v16  ;;  %v2006_v20 = vadd.f32 1.0, %v2748_v17 }
 0x57d   :  { %v2752_v21 = vpop.eup %2751  ;;  %2761 = vrcp.f32 %v2004_v18  ;;  %v2005_v24 = vadd.f32 1.0, %v2750_v19 }
 0x57e   :  { %2763 = vrcp.f32 %v2006_v20  ;;  %v2007_v25 = vadd.f32 1.0, %v2752_v21 }
 0x57f   :  { %2765 = vrcp.f32 %v2005_v24 }
 0x580   :  { %2767 = vrcp.f32 %v2007_v25 }
 0x583   :  { %v2754_v34 = vpop.eup %2753 }
 0x584   :  { %v2756_v38 = vpop.eup %2755  ;;  %v2028_v39 = vmin.f32 %v2754_v34, 1.0 }
 0x585   :  { %v2758_v40 = vpop.eup %2757  ;;  %v2030_v41 = vmin.f32 %v2756_v38, 1.0  ;;  %v1896_v42 = vpop.f32.mrb[20].mxu0 }
 0x586   :  { %v1939_v43 = vpop.f32.mrb[20].mxu1  ;;  %v2760_v44 = vpop.eup %2759  ;;  %v2029_v46 = vmin.f32 %v2758_v40, 1.0  ;;  %v1897_v48 = vadd.f32 %v1896_v42, %v3523_v31 }
 0x587   :  { %v1940_v45 = vadd.f32 %v1939_v43, %v3526_v33  ;;  %v1898_v50 = vpop.f32.mrb[21].mxu0  ;;  %v1941_v51 = vpop.f32.mrb[21].mxu1  ;;  %v2031_v32 = vmin.f32 %v2760_v44, 1.0 }
 0x588   :  { %v2762_v52 = vpop.eup %2761  ;;  %v1899_v53 = vadd.f32 %v1898_v50, %v3529_v36  ;;  %v1942_v54 = vadd.f32 %v1941_v51, %v3532_v37  ;;  %v1900_v55 = vpop.f32.mrb[22].mxu0  ;;  %v2060_v58 = vcombine.low %v2028_v39, %v2029_v46  ;;  %v2061_v59 = vcombine.high %v2028_v39, %v2029_v46 }
 0x589   :  { %v1943_v56 = vpop.f32.mrb[22].mxu1  ;;  %v2764_v57 = vpop.eup %2763  ;;  %v2036_v60 = vmin.f32 %v2762_v52, 1.0  ;;  %v1952_v35 = vsub.f32 0.0, %v1897_v48  ;;  %v2062_v0 = vcombine.low %v2030_v41, %v2031_v32  ;;  %v2063_v1 = vcombine.high %v2030_v41, %v2031_v32 }
 0x58a   :  { %v1902_v61 = vpop.f32.mrb[23].mxu0  ;;  %v1945_v62 = vpop.f32.mrb[23].mxu1  ;;  %v2038_v2 = vmin.f32 %v2764_v57, 1.0  ;;  %v1954_v3 = vsub.f32 0.0, %v1940_v45  ;;  %v2070_v5 = vrot.slane %v2060_v58, %v3535_v47  ;;  %v2077_v6 = vrot.slane %v2061_v59, %v3535_v47 }
 0x58b   :  { %v2766_v63 = vpop.eup %2765  ;;  %v1972_v8 = vmul.f32 1.442695, %v1952_v35  ;;  %v2084_v9 = vrot.slane %v2062_v0, %v3535_v47  ;;  %v2091_v10 = vrot.slane %v2063_v1, %v3535_v47  ;;  %v1953_v14 = vsub.f32 0.0, %v1899_v53 }
 0x58c   :  { %v2768_v4 = vpop.eup %2767  ;;  %v2037_v7 = vmin.f32 %v2766_v63, 1.0  ;;  %v1976_v12 = vmul.f32 1.442695, %v1954_v3  ;;  %v1955_v24 = vsub.f32 0.0, %v1942_v54  ;;  %v1901_v25 = vadd.f32 %v1900_v55, %v3523_v31 }
 0x58d   :  { %v2039_v11 = vmin.f32 %v2768_v4, 1.0  ;;  %2769 = vpow2.f32 %v1972_v8  ;;  %v2092_v15 = vcombine.low %v2070_v5, %v2084_v9  ;;  %v2093_v16 = vcombine.high %v2070_v5, %v2084_v9 }
 0x58e   :  { %v2132_v49 = vcombine.low %v2036_v60, %v2037_v7  ;;  %v2133_v13 = vcombine.high %v2036_v60, %v2037_v7  ;;  %v2094_v17 = vcombine.low %v2077_v6, %v2091_v10  ;;  %v2095_v18 = vcombine.high %v2077_v6, %v2091_v10 }
 0x58f   :  { %v2134_v21 = vcombine.low %v2038_v2, %v2039_v11  ;;  %v2135_v22 = vcombine.high %v2038_v2, %v2039_v11  ;;  %2220 = vst [vmem:[#allocation2] sm:$0xff] %v2092_v15  ;;  %2222 = vst [vmem:[#allocation2 + $0x10] sm:$0xff] %v2093_v16  ;;  %2771 = vpow2.f32 %v1976_v12  ;;  %v1974_v23 = vmul.f32 1.442695, %v1953_v14 }
 0x590   :  { %v2142_v19 = vrot.slane %v2132_v49, %v3535_v47  ;;  %v2149_v20 = vrot.slane %v2133_v13, %v3535_v47  ;;  %2224 = vst [vmem:[#allocation2 + $0x20] sm:$0xff] %v2094_v17  ;;  %2226 = vst [vmem:[#allocation2 + $0x30] sm:$0xff] %v2095_v18  ;;  %v1944_v28 = vadd.f32 %v1943_v56, %v3526_v33  ;;  %v1978_v30 = vmul.f32 1.442695, %v1955_v24 }
 0x591   :  { %v2156_v26 = vrot.slane %v2134_v21, %v3535_v47  ;;  %v2163_v27 = vrot.slane %v2135_v22, %v3535_v47  ;;  %v1903_v29 = vadd.f32 %v1902_v61, %v3529_v36  ;;  %2773 = vpow2.f32 %v1974_v23 }
 0x592   :  { %v1960_v34 = vsub.f32 0.0, %v1901_v25  ;;  %v1946_v38 = vadd.f32 %v1945_v62, %v3532_v37  ;;  %2775 = vpow2.f32 %v1978_v30  ;;  %v1962_v31 = vsub.f32 0.0, %v1944_v28 }
 0x593   :  { %v2164_v39 = vcombine.low %v2142_v19, %v2156_v26  ;;  %v2165_v40 = vcombine.high %v2142_v19, %v2156_v26  ;;  %v2166_v41 = vcombine.low %v2149_v20, %v2163_v27  ;;  %v2167_v42 = vcombine.high %v2149_v20, %v2163_v27 }
 0x594   :  { %v1988_v43 = vmul.f32 1.442695, %v1960_v34  ;;  %v1961_v44 = vsub.f32 0.0, %v1903_v29  ;;  %v1963_v33 = vsub.f32 0.0, %v1946_v38  ;;  %v1992_v36 = vmul.f32 1.442695, %v1962_v31 }
 0x595   :  { %2228 = vst [vmem:[#allocation2 + $0x40] sm:$0xff] %v2164_v39  ;;  %2230 = vst [vmem:[#allocation2 + $0x50] sm:$0xff] %v2165_v40 }
 0x596   :  { %2232 = vst [vmem:[#allocation2 + $0x60] sm:$0xff] %v2166_v41  ;;  %2234 = vst [vmem:[#allocation2 + $0x70] sm:$0xff] %v2167_v42  ;;  %2777 = vpow2.f32 %v1988_v43  ;;  %v1990_v46 = vmul.f32 1.442695, %v1961_v44  ;;  %v1994_v45 = vmul.f32 1.442695, %v1963_v33 }
 0x597   :  { %v2770_v48 = vpop.eup %2769  ;;  %2779 = vpow2.f32 %v1992_v36 }
 0x598   :  { %v2000_v50 = vadd.f32 1.0, %v2770_v48  ;;  %2781 = vpow2.f32 %v1990_v46 }
 0x599   :  { %v2772_v37 = vpop.eup %2771 }
 0x59a   :  { %2783 = vrcp.f32 %v2000_v50  ;;  %v2002_v51 = vadd.f32 1.0, %v2772_v37 }
 0x59b   :  { %2785 = vpow2.f32 %v1994_v45  ;;  %v2774_v52 = vpop.eup %2773 }
 0x59c   :  { %2787 = vrcp.f32 %v2002_v51  ;;  %v2001_v32 = vadd.f32 1.0, %v2774_v52  ;;  %v2776_v53 = vpop.eup %2775 }
 0x59d   :  { %v2003_v54 = vadd.f32 1.0, %v2776_v53 }
 0x59e   :  { %2789 = vrcp.f32 %v2001_v32 }
 0x59f   :  { %2791 = vrcp.f32 %v2003_v54 }
 0x5a0   :  { %v2778_v55 = vpop.eup %2777 }
 0x5a1   :  { %v2008_v56 = vadd.f32 1.0, %v2778_v55  ;;  %v2780_v57 = vpop.eup %2779 }
 0x5a2   :  { %v2782_v58 = vpop.eup %2781  ;;  %v2010_v59 = vadd.f32 1.0, %v2780_v57 }
 0x5a3   :  { %2793 = vrcp.f32 %v2008_v56  ;;  %v2009_v35 = vadd.f32 1.0, %v2782_v58 }
 0x5a4   :  { %v2784_v60 = vpop.eup %2783  ;;  %2795 = vrcp.f32 %v2010_v59 }
 0x5a5   :  { %v2786_v61 = vpop.eup %2785  ;;  %2797 = vrcp.f32 %v2009_v35  ;;  %v2032_v0 = vmin.f32 %v2784_v60, 1.0 }
 0x5a6   :  { %v2011_v62 = vadd.f32 1.0, %v2786_v61  ;;  %v2788_v63 = vpop.eup %2787 }
 0x5a7   :  { %v2034_v2 = vmin.f32 %v2788_v63, 1.0 }
 0x5a8   :  { %2799 = vrcp.f32 %v2011_v62  ;;  %v2790_v1 = vpop.eup %2789 }
 0x5a9   :  { %v2033_v3 = vmin.f32 %v2790_v1, 1.0  ;;  %v2792_v4 = vpop.eup %2791 }
 0x5aa   :  { %v2035_v7 = vmin.f32 %v2792_v4, 1.0 }
 0x5ab   :  { %v2096_v5 = vcombine.low %v2032_v0, %v2033_v3  ;;  %v2097_v6 = vcombine.high %v2032_v0, %v2033_v3 }
 0x5ac   :  { %v2098_v11 = vcombine.low %v2034_v2, %v2035_v7  ;;  %v2099_v12 = vcombine.high %v2034_v2, %v2035_v7 }
 0x5ad   :  { %v2794_v8 = vpop.eup %2793  ;;  %v2106_v9 = vrot.slane %v2096_v5, %v3535_v47  ;;  %v2113_v10 = vrot.slane %v2097_v6, %v3535_v47 }
 0x5ae   :  { %v2796_v49 = vpop.eup %2795  ;;  %v2040_v13 = vmin.f32 %v2794_v8, 1.0  ;;  %v2120_v15 = vrot.slane %v2098_v11, %v3535_v47  ;;  %v2127_v16 = vrot.slane %v2099_v12, %v3535_v47 }
 0x5af   :  { %v2798_v14 = vpop.eup %2797  ;;  %v2042_v17 = vmin.f32 %v2796_v49, 1.0 }
 0x5b0   :  { %v2041_v18 = vmin.f32 %v2798_v14, 1.0  ;;  %v2128_v20 = vcombine.low %v2106_v9, %v2120_v15  ;;  %v2129_v21 = vcombine.high %v2106_v9, %v2120_v15  ;;  %v2130_v22 = vcombine.low %v2113_v10, %v2127_v16 }
 0x5b1   :  { %v2131_v23 = vcombine.high %v2113_v10, %v2127_v16 }
 0x5b2   :  { %v2800_v19 = vpop.eup %2799  ;;  %v2168_v24 = vcombine.low %v2040_v13, %v2041_v18  ;;  %v2169_v25 = vcombine.high %v2040_v13, %v2041_v18  ;;  %2221 = vst [vmem:[#allocation2 + $0x8] sm:$0xff] %v2128_v20  ;;  %2223 = vst [vmem:[#allocation2 + $0x18] sm:$0xff] %v2129_v21 }
 0x5b3   :  { %v2043_v26 = vmin.f32 %v2800_v19, 1.0  ;;  %2225 = vst [vmem:[#allocation2 + $0x28] sm:$0xff] %v2130_v22  ;;  %2227 = vst [vmem:[#allocation2 + $0x38] sm:$0xff] %v2131_v23 }
 0x5b4   :  { %v2178_v27 = vrot.slane %v2168_v24, %v3535_v47  ;;  %v2185_v28 = vrot.slane %v2169_v25, %v3535_v47 }
 0x5b5   :  { %v2170_v29 = vcombine.low %v2042_v17, %v2043_v26  ;;  %v2171_v30 = vcombine.high %v2042_v17, %v2043_v26 }
 0x5b7   :  { %v2192_v34 = vrot.slane %v2170_v29, %v3535_v47  ;;  %v2199_v38 = vrot.slane %v2171_v30, %v3535_v47 }
 0x5b9   :  { %v2200_v39 = vcombine.low %v2178_v27, %v2192_v34  ;;  %v2201_v40 = vcombine.high %v2178_v27, %v2192_v34  ;;  %v2202_v41 = vcombine.low %v2185_v28, %v2199_v38  ;;  %v2203_v42 = vcombine.high %v2185_v28, %v2199_v38 }
 0x5bb   :  { %2229 = vst [vmem:[#allocation2 + $0x48] sm:$0xff] %v2200_v39  ;;  %2231 = vst [vmem:[#allocation2 + $0x58] sm:$0xff] %v2201_v40 }
 0x5bc   :  { %2233 = vst [vmem:[#allocation2 + $0x68] sm:$0xff] %v2202_v41  ;;  %2235 = vst [vmem:[#allocation2 + $0x78] sm:$0xff] %v2203_v42 }
 0x5bd   :  { %2240 = vsyncadd [#allocation3], 1792  ;;  %s2830_s12 = smov [#allocation2]  }
 0x5be   :  { %s2241_s30 = sshll.u32 %s2830_s12, 4  ;;  %s2242_s30 = int_to_ptr.vmem [resolvable:$true] %s2241_s30 }
 0x5bf   :  { %s2801_s1 = scalar_lea.vmem %s2242_s30, 256  ;;  %s2805_s14 = scalar_lea.vmem %s2242_s30, 2048 }
 0x5c0   :  { %p2802_p0 = scmp.ne.s32.totalorder %s2242_s30, %s2801_s1  ;;  %p2806_p1 = scmp.lt.s32.totalorder %s2242_s30, %s2242_s30 }
 0x5c1   :  { %p2807_p2 = scmp.lt.s32.totalorder %s2805_s14, %s2801_s1 }
 0x5c3   :  { %p2808_p3 = por %p2807_p2, %p2806_p1 }
 0x5c5   :  { %p2809_p4 = pnand %p2808_p3, %p2802_p0 }
 0x5c7   :  { %2812 = shalt.err (!%p2809_p4)
}
 0x5c8   :  { %s2813_s16 = scalar_lea.hbm %s3586_s13, 256 }
 0x5c9   :  { %p2814_p5 = scmp.ne.s32.totalorder %s3586_s13, %s2813_s16  ;;  %p2817_p6 = scmp.lt.u32.totalorder %s2813_s16, %s3586_s13 }
 0x5cb   :  { %p2819_p7 = pnand %p2817_p6, %p2814_p5 }
 0x5cd   :  { %2822 = shalt.err (!%p2819_p7)
}
 0x5ce   :  { %s2831_s19 = smov 256   ;;  %s2832_s20 = smov 16  }
 0x5cf   :  { %2247 = dma.vmem_to_hbm [thread:$0]  %s2242_s30, 256, %s3586_s13, [#allocation3], %s2831_s19, %s2831_s19, %s2832_s20  }
 0x5d0   :  { %2823 = dma.done.wait [#allocation3], 2048  }
 0x5d1   :  { %2824 = vsyncadd [#allocation3], 4294965248 }
 0x5d2   :  { %2251 = vsyncpa [#allocation3], 1 }

</bundles_post_ra>
